<compile_context>
chip_gen: v7x
topology: tpu7x:2x2x1
jax: 0.10.0
libtpu: 0.0.40
codegen_flags: <defaults>
</compile_context>

<pallas_src>
import functools

import jax
import jax.numpy as jnp
from jax.experimental import pallas as pl
from jax.experimental.pallas import tpu as pltpu

BN_EPS = 1e-5
LANES = 128   # lane width of the weight slab / final (lane-dense) output store
HID = 64      # hidden channel width of the module

# bias / gamma / beta slab row indices
(B1, G1, BE1, B2, G2, BE2, B3, G3, BE3, B4, G4, BE4, B5, BS, GF, BEF) = range(16)


def _round_up(n, m):
    return (n + m - 1) // m * m


# --------------------------------------------------------------------------
# Pallas kernel: whole forward pass fused (convs / BN / ReLU / skip add)
# --------------------------------------------------------------------------
def downsample_kernel(L, cin_pad, x_ref, w_ref, v_ref, o_ref, cat_ref, a3_ref):
    M = x_ref.shape[0]           # N*L rows (batch folded into the matmul M dim)
    Lo = L // 2
    Mo = (M // L) * Lo
    f32, bf16 = jnp.float32, jnp.bfloat16

    # static row offsets into the tightly K-packed weight slab (see pack_params)
    r1 = cin_pad
    o_w1 = 0
    o_w2 = o_w1 + r1
    o_w3 = o_w2 + 3 * HID
    o_w4 = o_w3 + 3 * HID
    o_w5 = o_w4 + 3 * HID
    o_ws = o_w5 + HID

    V = v_ref[...]                          # (16, 128) f32 bias/gamma/beta slab
    vec = lambda i, c: V[i:i + 1, :c]       # (1, c)

    # per-row sequence-position masks (batch folded into M; built once)
    l_idx = jax.lax.broadcasted_iota(jnp.int32, (M, 1), 0) % L
    not_first = l_idx != 0                  # row has a valid left neighbour
    not_last = l_idx != (L - 1)             # row has a valid right neighbour
    lo_idx = jax.lax.broadcasted_iota(jnp.int32, (Mo, 1), 0) % Lo
    out_not_first = lo_idx != 0             # output row 0 of each batch block

    def bn_relu(z, gi, bei):
        # training-mode BatchNorm1d, single-pass batch stats + fused scale/shift
        c = z.shape[-1]
        m = jnp.mean(z, axis=0, keepdims=True)
        m2 = jnp.mean(z * z, axis=0, keepdims=True)
        var = jnp.maximum(m2 - m * m, 0.0)
        scale = jax.lax.rsqrt(var + BN_EPS) * vec(gi, c)
        shift = vec(bei, c) - m * scale
        return jnp.maximum(z * scale + shift, 0.0)

    def conv_k1(a_f32, row0, rows, cout, bi):
        w = w_ref[row0:row0 + rows, :cout]                       # bf16
        return jnp.dot(a_f32.astype(bf16), w,
                       preferred_element_type=f32) + vec(bi, cout)

    def conv_k3(taps_f32, row0, cpt, cout, bi):
        # taps: 3 x (rows, cpt) f32, already boundary-masked.  Stage them into
        # the bf16 xcat buffer at lane offsets 0 / cpt / 2*cpt and do ONE fused
        # K=3*cpt MXU matmul against the tap-stacked weight rows.
        rows = taps_f32[0].shape[0]
        for t, tap in enumerate(taps_f32):
            cat_ref[0:rows, t * cpt:(t + 1) * cpt] = tap.astype(bf16)
        xcat = cat_ref[0:rows, 0:3 * cpt]                        # (rows, 3*cpt)
        w = w_ref[row0:row0 + 3 * cpt, :cout]                    # (3*cpt, cout)
        return jnp.dot(xcat, w, preferred_element_type=f32) + vec(bi, cout)

    x = x_ref[...]                                               # (M, 128) f32

    # conv1 (k=1, Cin->64) + BN + ReLU, full M
    a = bn_relu(conv_k1(x[:, :r1], o_w1, r1, HID, B1), G1, BE1)

    # conv2 / conv3 (k=3, pad=1, 64->64) + BN + ReLU, full M
    def stride1_taps(h):
        left = jnp.where(not_first, pltpu.roll(h, 1, axis=0), 0.0)
        right = jnp.where(not_last, pltpu.roll(h, M - 1, axis=0), 0.0)
        return (left, h, right)

    a = bn_relu(conv_k3(stride1_taps(a), o_w2, HID, HID, B2), G2, BE2)
    a = bn_relu(conv_k3(stride1_taps(a), o_w3, HID, HID, B3), G3, BE3)

    # conv4 (k=3, pad=1, stride=2, 64->64): gather even/odd rows with strided
    # reads and run the matmul at half M (Mo rows) — no conv-then-downselect.
    a3_ref[...] = a
    even = a3_ref[pl.ds(0, Mo, stride=2), :]                     # rows 0,2,...
    odd = a3_ref[pl.ds(1, Mo, stride=2), :]                      # rows 1,3,...
    left = jnp.where(out_not_first, pltpu.roll(odd, 1, axis=0), 0.0)
    a = bn_relu(conv_k3((left, even, odd), o_w4, HID, HID, B4), G4, BE4)

    # conv5 (k=1, 64->Cout), at Mo rows; padded output lanes stay exactly zero
    main = conv_k1(a, o_w5, HID, LANES, B5)

    # skip conv (k=3, pad=1, stride=2, Cin->Cout), at Mo rows, straight from x
    x_even = x_ref[pl.ds(0, Mo, stride=2), :][:, :r1]
    x_odd = x_ref[pl.ds(1, Mo, stride=2), :][:, :r1]
    x_left = jnp.where(out_not_first, pltpu.roll(x_odd, 1, axis=0), 0.0)
    skip = conv_k3((x_left, x_even, x_odd), o_ws, r1, LANES, BS)

    # add + final BN + ReLU — single lane-dense (Mo, 128) store
    o_ref[...] = bn_relu(main + skip, GF, BEF)
    # TODO(synk): BatchNorm running_mean / running_var buffer updates (training
    # side effect of nn.BatchNorm1d) are not materialized as outputs.


# --------------------------------------------------------------------------
# One-time parameter packing (done at init, kept as jit constants)
# --------------------------------------------------------------------------
def pack_params(params, cin_pad):
    cin = params["w1"].shape[1]
    cout = params["w5"].shape[2]
    assert cin <= LANES and cout <= LANES and HID <= LANES

    rows = [cin_pad, 3 * HID, 3 * HID, 3 * HID, HID, 3 * cin_pad]
    offs, o = [], 0
    for r in rows:
        offs.append(o)
        o += r
    wslab = jnp.zeros((o, LANES), jnp.float32)

    def put(slab, off, w, per_tap):
        K, ci, co = w.shape
        for t in range(K):
            slab = slab.at[off + t * per_tap:off + t * per_tap + ci, :co].set(w[t])
        return slab

    for off, name, per_tap in zip(
            offs, ("w1", "w2", "w3", "w4", "w5", "ws"),
            (cin_pad, HID, HID, HID, HID, cin_pad)):
        wslab = put(wslab, off, params[name], per_tap)
    wslab = wslab.astype(jnp.bfloat16)        # pre-cast once: bf16 MXU operands

    names = ("b1", "g1", "be1", "b2", "g2", "be2", "b3", "g3", "be3",
             "b4", "g4", "be4", "b5", "bs", "gf", "bef")
    vslab = jnp.zeros((16, LANES), jnp.float32)
    for i, n in enumerate(names):
        v = params[n].reshape(-1)
        vslab = vslab.at[i, :v.shape[0]].set(v)
    return wslab, vslab


def make_downsample(params):
    """Pack parameters once and return a jitted forward fn over (N, L, Cin)."""
    cin = params["w1"].shape[1]
    cout = params["w5"].shape[2]
    cin_pad = _round_up(cin, 16)          # 16-row (bf16 sublane-tile) aligned taps
    wslab, vslab = pack_params(params, cin_pad)

    @jax.jit
    def forward(x):
        N, L, Cin = x.shape
        assert Cin == cin
        assert L % 2 == 0  # TODO(synk): odd L (ceil output length) unsupported
        M, Lo = N * L, L // 2
        Mo = N * Lo
        # flatten batch into rows, zero-pad channels to 128 lanes
        xf = jnp.zeros((M, LANES), jnp.float32).at[:, :Cin].set(x.reshape(M, Cin))

        y = pl.pallas_call(
            functools.partial(downsample_kernel, L, cin_pad),
            out_shape=jax.ShapeDtypeStruct((Mo, LANES), jnp.float32),
            in_specs=[pl.BlockSpec(memory_space=pltpu.MemorySpace.VMEM)] * 3,
            out_specs=pl.BlockSpec(memory_space=pltpu.MemorySpace.VMEM),
            scratch_shapes=[
                pltpu.VMEM((M, 3 * HID), jnp.bfloat16),   # xcat staging
                pltpu.VMEM((M, HID), jnp.float32),        # layer-3 act (strided gather)
            ],
            compiler_params=pltpu.CompilerParams(
                vmem_limit_bytes=32 * 1024 * 1024),
        )(xf, wslab, vslab)
        return y[:, :cout].reshape(N, Lo, cout)

    return forward


# --------------------------------------------------------------------------
# Deterministic parameter init (synthetic; shapes from the module __init__)
# --------------------------------------------------------------------------
def init_params(key, cin, cout):
    keys = iter(jax.random.split(key, 32))

    def nrm(shape, scale):
        return (scale * jax.random.normal(next(keys), shape)).astype(jnp.float32)

    def conv_wb(k, ci, co):
        return nrm((k, ci, co), 0.2), nrm((1, co), 0.05)

    def bn_gb(c):
        return 1.0 + nrm((1, c), 0.1), nrm((1, c), 0.05)

    p = {}
    p["w1"], p["b1"] = conv_wb(1, cin, 64)
    p["g1"], p["be1"] = bn_gb(64)
    p["w2"], p["b2"] = conv_wb(3, 64, 64)
    p["g2"], p["be2"] = bn_gb(64)
    p["w3"], p["b3"] = conv_wb(3, 64, 64)
    p["g3"], p["be3"] = bn_gb(64)
    p["w4"], p["b4"] = conv_wb(3, 64, 64)
    p["g4"], p["be4"] = bn_gb(64)
    p["w5"], p["b5"] = conv_wb(1, 64, cout)
    p["ws"], p["bs"] = conv_wb(3, cin, cout)
    p["gf"], p["bef"] = bn_gb(cout)
    return p


# --------------------------------------------------------------------------
# Pure-JAX reference (independent path).  matmul_dtype=bf16 mirrors the
# kernel's bf16 MXU operands (f32 accumulation) for a tight comparison.
# --------------------------------------------------------------------------
def reference_forward(x, p, matmul_dtype=jnp.float32):
    q = lambda a: a.astype(matmul_dtype).astype(jnp.float32)

    def conv(a, w, b, stride=1):
        K = w.shape[0]
        pad = (K - 1) // 2
        N, Lin, _ = a.shape
        ap = jnp.pad(a, ((0, 0), (pad, pad), (0, 0)))
        Lout = (Lin + 2 * pad - K) // stride + 1
        y = 0.0
        for t in range(K):
            sl = ap[:, t: t + (Lout - 1) * stride + 1: stride, :]
            y = y + jnp.einsum("nlc,co->nlo", q(sl), q(w[t]),
                               precision=jax.lax.Precision.HIGHEST)
        return y + b.reshape(1, 1, -1)

    def bn(a, g, be):
        m = jnp.mean(a, axis=(0, 1), keepdims=True)
        v = jnp.mean((a - m) ** 2, axis=(0, 1), keepdims=True)
        return (a - m) / jnp.sqrt(v + BN_EPS) * g.reshape(1, 1, -1) + be.reshape(1, 1, -1)

    relu = lambda z: jnp.maximum(z, 0.0)

    a = relu(bn(conv(x, p["w1"], p["b1"]), p["g1"], p["be1"]))
    a = relu(bn(conv(a, p["w2"], p["b2"]), p["g2"], p["be2"]))
    a = relu(bn(conv(a, p["w3"], p["b3"]), p["g3"], p["be3"]))
    a = relu(bn(conv(a, p["w4"], p["b4"], stride=2), p["g4"], p["be4"]))
    main = conv(a, p["w5"], p["b5"])
    skip = conv(x, p["ws"], p["bs"], stride=2)
    return relu(bn(main + skip, p["gf"], p["bef"]))


if __name__ == "__main__":
    N, Cin, L, Cout = 2, 4, 16, 32   # PyTorch input would be (N, Cin, L) = (2, 4, 16)
    key = jax.random.PRNGKey(0)
    kx, kp = jax.random.split(key)

    # layout: (N, L, C) channels-last == PyTorch (N, C, L) transposed (0, 2, 1)
    x_nlc = jax.random.normal(kx, (N, L, Cin), dtype=jnp.float32)
    params = init_params(kp, Cin, Cout)

    forward = make_downsample(params)          # params packed once here
    y = jax.block_until_ready(forward(x_nlc))

    Lout = (L - 1) // 2 + 1
    assert y.shape == (N, Lout, Cout), y.shape

    # Tight check vs a reference that mirrors the kernel's bf16 MXU operands.
    y_bf = reference_forward(x_nlc, params, matmul_dtype=jnp.bfloat16)
    err_bf = float(jnp.max(jnp.abs(y - y_bf)))
    assert bool(jnp.allclose(y, y_bf, atol=5e-3, rtol=5e-3)), err_bf

    # Global sanity check vs exact f32 module math (loose: bf16 MXU operands).
    y_f32 = reference_forward(x_nlc, params, matmul_dtype=jnp.float32)
    rel = float(jnp.linalg.norm(y - y_f32) / (jnp.linalg.norm(y_f32) + 1e-12))
    assert rel < 3e-2, rel

    print("KERNEL_OK")
</pallas_src>

<mosaic_0001>
module attributes {stable_mosaic.version = 11 : i64} {
  func.func @downsample_kernel(%arg0: memref<32x128xf32, #tpu.memory_space<vmem>>, %arg1: memref<704x128xbf16, #tpu.memory_space<vmem>>, %arg2: memref<16x128xf32, #tpu.memory_space<vmem>>, %arg3: memref<16x128xf32, #tpu.memory_space<vmem>>, %arg4: memref<32x192xbf16, #tpu.memory_space<vmem>>, %arg5: memref<32x64xf32, #tpu.memory_space<vmem>>) attributes {dimension_semantics = [], scalar_prefetch = 0 : i64, scratch_operands = 2 : i64, tpu.core_type = #tpu.core_type<tc>} {
    %c0 = arith.constant 0 : index
    %c0_0 = arith.constant 0 : index
    %0 = vector.load %arg2[%c0, %c0_0] : memref<16x128xf32, #tpu.memory_space<vmem>>, vector<16x128xf32>
    %1 = tpu.iota {dimensions = array<i32: 0>} : vector<32x1xi32>
    %c16_i32 = arith.constant 16 : i32
    %c0_i32 = arith.constant 0 : i32
    %2 = arith.cmpi eq, %c16_i32, %c0_i32 : i32
    %c1_i32 = arith.constant 1 : i32
    %3 = arith.select %2, %c1_i32, %c16_i32 : i32
    %4 = vector.broadcast %3 : i32 to vector<32x1xi32>
    %5 = arith.remsi %1, %4 : vector<32x1xi32>
    %c0_i32_1 = arith.constant 0 : i32
    %6 = vector.broadcast %c0_i32_1 : i32 to vector<32x1xi32>
    %7 = arith.cmpi ne, %5, %6 : vector<32x1xi32>
    %c0_i32_2 = arith.constant 0 : i32
    %8 = vector.broadcast %c0_i32_2 : i32 to vector<32x1xi32>
    %9 = arith.cmpi slt, %5, %8 : vector<32x1xi32>
    %c0_i32_3 = arith.constant 0 : i32
    %10 = arith.cmpi slt, %3, %c0_i32_3 : i32
    %11 = vector.broadcast %10 : i1 to vector<32x1xi1>
    %12 = vector.broadcast %11 : vector<32x1xi1> to vector<32x1xi1>
    %13 = arith.xori %9, %12 : vector<32x1xi1>
    %14 = arith.andi %13, %7 : vector<32x1xi1>
    %15 = vector.broadcast %3 : i32 to vector<32x1xi32>
    %16 = arith.addi %5, %15 : vector<32x1xi32>
    %17 = arith.select %14, %16, %5 : vector<32x1xi1>, vector<32x1xi32>
    %c0_i32_4 = arith.constant 0 : i32
    %18 = vector.broadcast %c0_i32_4 : i32 to vector<32x1xi32>
    %19 = arith.cmpi ne, %17, %18 : vector<32x1xi32>
    %c15_i32 = arith.constant 15 : i32
    %20 = vector.broadcast %c15_i32 : i32 to vector<32x1xi32>
    %21 = arith.cmpi ne, %17, %20 : vector<32x1xi32>
    %22 = tpu.iota {dimensions = array<i32: 0>} : vector<16x1xi32>
    %c8_i32 = arith.constant 8 : i32
    %c0_i32_5 = arith.constant 0 : i32
    %23 = arith.cmpi eq, %c8_i32, %c0_i32_5 : i32
    %c1_i32_6 = arith.constant 1 : i32
    %24 = arith.select %23, %c1_i32_6, %c8_i32 : i32
    %25 = vector.broadcast %24 : i32 to vector<16x1xi32>
    %26 = arith.remsi %22, %25 : vector<16x1xi32>
    %c0_i32_7 = arith.constant 0 : i32
    %27 = vector.broadcast %c0_i32_7 : i32 to vector<16x1xi32>
    %28 = arith.cmpi ne, %26, %27 : vector<16x1xi32>
    %c0_i32_8 = arith.constant 0 : i32
    %29 = vector.broadcast %c0_i32_8 : i32 to vector<16x1xi32>
    %30 = arith.cmpi slt, %26, %29 : vector<16x1xi32>
    %c0_i32_9 = arith.constant 0 : i32
    %31 = arith.cmpi slt, %24, %c0_i32_9 : i32
    %32 = vector.broadcast %31 : i1 to vector<16x1xi1>
    %33 = vector.broadcast %32 : vector<16x1xi1> to vector<16x1xi1>
    %34 = arith.xori %30, %33 : vector<16x1xi1>
    %35 = arith.andi %34, %28 : vector<16x1xi1>
    %36 = vector.broadcast %24 : i32 to vector<16x1xi32>
    %37 = arith.addi %26, %36 : vector<16x1xi32>
    %38 = arith.select %35, %37, %26 : vector<16x1xi1>, vector<16x1xi32>
    %c0_i32_10 = arith.constant 0 : i32
    %39 = vector.broadcast %c0_i32_10 : i32 to vector<16x1xi32>
    %40 = arith.cmpi ne, %38, %39 : vector<16x1xi32>
    %c0_11 = arith.constant 0 : index
    %c0_12 = arith.constant 0 : index
    %41 = vector.load %arg0[%c0_11, %c0_12] : memref<32x128xf32, #tpu.memory_space<vmem>>, vector<32x128xf32>
    %42 = vector.extract_strided_slice %41 {offsets = [0, 0], sizes = [32, 16], strides = [1, 1]} : vector<32x128xf32> to vector<32x16xf32>
    %c0_13 = arith.constant 0 : index
    %c0_14 = arith.constant 0 : index
    %43 = vector.load %arg1[%c0_13, %c0_14] : memref<704x128xbf16, #tpu.memory_space<vmem>>, vector<16x64xbf16>
    %44 = arith.truncf %42 : vector<32x16xf32> to vector<32x16xbf16>
    %cst = arith.constant dense<0.000000e+00> : vector<32x64xf32>
    %45 = tpu.matmul %44, %43, %cst {dimension_numbers = #tpu.dot_dimension_numbers<[1], [0], [0], [1], [0, 0, 1, 1], [], []>} : vector<32x16xbf16>, vector<16x64xbf16>, vector<32x64xf32> -> vector<32x64xf32>
    %46 = vector.extract_strided_slice %0 {offsets = [0, 0], sizes = [1, 64], strides = [1, 1]} : vector<16x128xf32> to vector<1x64xf32>
    %47 = vector.broadcast %46 : vector<1x64xf32> to vector<32x64xf32>
    %48 = arith.addf %45, %47 : vector<32x64xf32>
    %cst_15 = arith.constant dense<0.000000e+00> : vector<64xf32>
    %49 = vector.multi_reduction <add>, %48, %cst_15 [0] : vector<32x64xf32> to vector<64xf32>
    %50 = vector.shape_cast %49 : vector<64xf32> to vector<1x64xf32>
    %cst_16 = arith.constant 3.200000e+01 : f32
    %51 = vector.broadcast %cst_16 : f32 to vector<1x64xf32>
    %52 = arith.divf %50, %51 : vector<1x64xf32>
    %53 = arith.mulf %48, %48 : vector<32x64xf32>
    %cst_17 = arith.constant dense<0.000000e+00> : vector<64xf32>
    %54 = vector.multi_reduction <add>, %53, %cst_17 [0] : vector<32x64xf32> to vector<64xf32>
    %55 = vector.shape_cast %54 : vector<64xf32> to vector<1x64xf32>
    %cst_18 = arith.constant 3.200000e+01 : f32
    %56 = vector.broadcast %cst_18 : f32 to vector<1x64xf32>
    %57 = arith.divf %55, %56 : vector<1x64xf32>
    %58 = arith.mulf %52, %52 : vector<1x64xf32>
    %59 = arith.subf %57, %58 : vector<1x64xf32>
    %cst_19 = arith.constant 0.000000e+00 : f32
    %60 = vector.broadcast %cst_19 : f32 to vector<1x64xf32>
    %61 = arith.maximumf %59, %60 : vector<1x64xf32>
    %cst_20 = arith.constant 9.99999974E-6 : f32
    %62 = vector.broadcast %cst_20 : f32 to vector<1x64xf32>
    %63 = arith.addf %61, %62 : vector<1x64xf32>
    %64 = math.rsqrt %63 : vector<1x64xf32>
    %65 = vector.extract_strided_slice %0 {offsets = [1, 0], sizes = [1, 64], strides = [1, 1]} : vector<16x128xf32> to vector<1x64xf32>
    %66 = arith.mulf %64, %65 : vector<1x64xf32>
    %67 = vector.extract_strided_slice %0 {offsets = [2, 0], sizes = [1, 64], strides = [1, 1]} : vector<16x128xf32> to vector<1x64xf32>
    %68 = arith.mulf %52, %66 : vector<1x64xf32>
    %69 = arith.subf %67, %68 : vector<1x64xf32>
    %70 = vector.broadcast %66 : vector<1x64xf32> to vector<32x64xf32>
    %71 = arith.mulf %48, %70 : vector<32x64xf32>
    %72 = vector.broadcast %69 : vector<1x64xf32> to vector<32x64xf32>
    %73 = arith.addf %71, %72 : vector<32x64xf32>
    %cst_21 = arith.constant 0.000000e+00 : f32
    %74 = vector.broadcast %cst_21 : f32 to vector<32x64xf32>
    %75 = arith.maximumf %73, %74 : vector<32x64xf32>
    %c1_i32_22 = arith.constant 1 : i32
    %76 = tpu.dynamic_rotate %75 by %c1_i32_22 dim 0 : vector<32x64xf32>, i32 -> vector<32x64xf32>
    %cst_23 = arith.constant 0.000000e+00 : f32
    %77 = vector.shape_cast %19 : vector<32x1xi1> to vector<32x1xi1>
    %78 = vector.broadcast %77 : vector<32x1xi1> to vector<32x64xi1>
    %79 = vector.broadcast %cst_23 : f32 to vector<32x64xf32>
    %80 = arith.select %78, %76, %79 : vector<32x64xi1>, vector<32x64xf32>
    %c31_i32 = arith.constant 31 : i32
    %81 = tpu.dynamic_rotate %75 by %c31_i32 dim 0 : vector<32x64xf32>, i32 -> vector<32x64xf32>
    %cst_24 = arith.constant 0.000000e+00 : f32
    %82 = vector.shape_cast %21 : vector<32x1xi1> to vector<32x1xi1>
    %83 = vector.broadcast %82 : vector<32x1xi1> to vector<32x64xi1>
    %84 = vector.broadcast %cst_24 : f32 to vector<32x64xf32>
    %85 = arith.select %83, %81, %84 : vector<32x64xi1>, vector<32x64xf32>
    %86 = arith.truncf %80 : vector<32x64xf32> to vector<32x64xbf16>
    %c0_25 = arith.constant 0 : index
    %c0_26 = arith.constant 0 : index
    %87 = vector.load %arg4[%c0_25, %c0_26] : memref<32x192xbf16, #tpu.memory_space<vmem>>, vector<32x64xbf16>
    tpu.vector_store %arg4[%c0_25, %c0_26], %86 {strides = array<i32>} : memref<32x192xbf16, #tpu.memory_space<vmem>>, vector<32x64xbf16>,
    %88 = arith.truncf %75 : vector<32x64xf32> to vector<32x64xbf16>
    %c0_27 = arith.constant 0 : index
    %c64 = arith.constant 64 : index
    %89 = vector.load %arg4[%c0_27, %c64] : memref<32x192xbf16, #tpu.memory_space<vmem>>, vector<32x64xbf16>
    tpu.vector_store %arg4[%c0_27, %c64], %88 {strides = array<i32>} : memref<32x192xbf16, #tpu.memory_space<vmem>>, vector<32x64xbf16>,
    %90 = arith.truncf %85 : vector<32x64xf32> to vector<32x64xbf16>
    %c0_28 = arith.constant 0 : index
    %c128 = arith.constant 128 : index
    %91 = vector.load %arg4[%c0_28, %c128] : memref<32x192xbf16, #tpu.memory_space<vmem>>, vector<32x64xbf16>
    tpu.vector_store %arg4[%c0_28, %c128], %90 {strides = array<i32>} : memref<32x192xbf16, #tpu.memory_space<vmem>>, vector<32x64xbf16>,
    %c0_29 = arith.constant 0 : index
    %c0_30 = arith.constant 0 : index
    %92 = vector.load %arg4[%c0_29, %c0_30] : memref<32x192xbf16, #tpu.memory_space<vmem>>, vector<32x192xbf16>
    %c16 = arith.constant 16 : index
    %c0_31 = arith.constant 0 : index
    %93 = vector.load %arg1[%c16, %c0_31] : memref<704x128xbf16, #tpu.memory_space<vmem>>, vector<192x64xbf16>
    %cst_32 = arith.constant dense<0.000000e+00> : vector<32x64xf32>
    %94 = tpu.matmul %92, %93, %cst_32 {dimension_numbers = #tpu.dot_dimension_numbers<[1], [0], [0], [1], [0, 0, 1, 1], [], []>} : vector<32x192xbf16>, vector<192x64xbf16>, vector<32x64xf32> -> vector<32x64xf32>
    %95 = vector.extract_strided_slice %0 {offsets = [3, 0], sizes = [1, 64], strides = [1, 1]} : vector<16x128xf32> to vector<1x64xf32>
    %96 = vector.broadcast %95 : vector<1x64xf32> to vector<32x64xf32>
    %97 = arith.addf %94, %96 : vector<32x64xf32>
    %cst_33 = arith.constant dense<0.000000e+00> : vector<64xf32>
    %98 = vector.multi_reduction <add>, %97, %cst_33 [0] : vector<32x64xf32> to vector<64xf32>
    %99 = vector.shape_cast %98 : vector<64xf32> to vector<1x64xf32>
    %cst_34 = arith.constant 3.200000e+01 : f32
    %100 = vector.broadcast %cst_34 : f32 to vector<1x64xf32>
    %101 = arith.divf %99, %100 : vector<1x64xf32>
    %102 = arith.mulf %97, %97 : vector<32x64xf32>
    %cst_35 = arith.constant dense<0.000000e+00> : vector<64xf32>
    %103 = vector.multi_reduction <add>, %102, %cst_35 [0] : vector<32x64xf32> to vector<64xf32>
    %104 = vector.shape_cast %103 : vector<64xf32> to vector<1x64xf32>
    %cst_36 = arith.constant 3.200000e+01 : f32
    %105 = vector.broadcast %cst_36 : f32 to vector<1x64xf32>
    %106 = arith.divf %104, %105 : vector<1x64xf32>
    %107 = arith.mulf %101, %101 : vector<1x64xf32>
    %108 = arith.subf %106, %107 : vector<1x64xf32>
    %cst_37 = arith.constant 0.000000e+00 : f32
    %109 = vector.broadcast %cst_37 : f32 to vector<1x64xf32>
    %110 = arith.maximumf %108, %109 : vector<1x64xf32>
    %cst_38 = arith.constant 9.99999974E-6 : f32
    %111 = vector.broadcast %cst_38 : f32 to vector<1x64xf32>
    %112 = arith.addf %110, %111 : vector<1x64xf32>
    %113 = math.rsqrt %112 : vector<1x64xf32>
    %114 = vector.extract_strided_slice %0 {offsets = [4, 0], sizes = [1, 64], strides = [1, 1]} : vector<16x128xf32> to vector<1x64xf32>
    %115 = arith.mulf %113, %114 : vector<1x64xf32>
    %116 = vector.extract_strided_slice %0 {offsets = [5, 0], sizes = [1, 64], strides = [1, 1]} : vector<16x128xf32> to vector<1x64xf32>
    %117 = arith.mulf %101, %115 : vector<1x64xf32>
    %118 = arith.subf %116, %117 : vector<1x64xf32>
    %119 = vector.broadcast %115 : vector<1x64xf32> to vector<32x64xf32>
    %120 = arith.mulf %97, %119 : vector<32x64xf32>
    %121 = vector.broadcast %118 : vector<1x64xf32> to vector<32x64xf32>
    %122 = arith.addf %120, %121 : vector<32x64xf32>
    %cst_39 = arith.constant 0.000000e+00 : f32
    %123 = vector.broadcast %cst_39 : f32 to vector<32x64xf32>
    %124 = arith.maximumf %122, %123 : vector<32x64xf32>
    %c1_i32_40 = arith.constant 1 : i32
    %125 = tpu.dynamic_rotate %124 by %c1_i32_40 dim 0 : vector<32x64xf32>, i32 -> vector<32x64xf32>
    %cst_41 = arith.constant 0.000000e+00 : f32
    %126 = vector.shape_cast %19 : vector<32x1xi1> to vector<32x1xi1>
    %127 = vector.broadcast %126 : vector<32x1xi1> to vector<32x64xi1>
    %128 = vector.broadcast %cst_41 : f32 to vector<32x64xf32>
    %129 = arith.select %127, %125, %128 : vector<32x64xi1>, vector<32x64xf32>
    %c31_i32_42 = arith.constant 31 : i32
    %130 = tpu.dynamic_rotate %124 by %c31_i32_42 dim 0 : vector<32x64xf32>, i32 -> vector<32x64xf32>
    %cst_43 = arith.constant 0.000000e+00 : f32
    %131 = vector.shape_cast %21 : vector<32x1xi1> to vector<32x1xi1>
    %132 = vector.broadcast %131 : vector<32x1xi1> to vector<32x64xi1>
    %133 = vector.broadcast %cst_43 : f32 to vector<32x64xf32>
    %134 = arith.select %132, %130, %133 : vector<32x64xi1>, vector<32x64xf32>
    %135 = arith.truncf %129 : vector<32x64xf32> to vector<32x64xbf16>
    %c0_44 = arith.constant 0 : index
    %c0_45 = arith.constant 0 : index
    %136 = vector.load %arg4[%c0_44, %c0_45] : memref<32x192xbf16, #tpu.memory_space<vmem>>, vector<32x64xbf16>
    tpu.vector_store %arg4[%c0_44, %c0_45], %135 {strides = array<i32>} : memref<32x192xbf16, #tpu.memory_space<vmem>>, vector<32x64xbf16>,
    %137 = arith.truncf %124 : vector<32x64xf32> to vector<32x64xbf16>
    %c0_46 = arith.constant 0 : index
    %c64_47 = arith.constant 64 : index
    %138 = vector.load %arg4[%c0_46, %c64_47] : memref<32x192xbf16, #tpu.memory_space<vmem>>, vector<32x64xbf16>
    tpu.vector_store %arg4[%c0_46, %c64_47], %137 {strides = array<i32>} : memref<32x192xbf16, #tpu.memory_space<vmem>>, vector<32x64xbf16>,
    %139 = arith.truncf %134 : vector<32x64xf32> to vector<32x64xbf16>
    %c0_48 = arith.constant 0 : index
    %c128_49 = arith.constant 128 : index
    %140 = vector.load %arg4[%c0_48, %c128_49] : memref<32x192xbf16, #tpu.memory_space<vmem>>, vector<32x64xbf16>
    tpu.vector_store %arg4[%c0_48, %c128_49], %139 {strides = array<i32>} : memref<32x192xbf16, #tpu.memory_space<vmem>>, vector<32x64xbf16>,
    %c0_50 = arith.constant 0 : index
    %c0_51 = arith.constant 0 : index
    %141 = vector.load %arg4[%c0_50, %c0_51] : memref<32x192xbf16, #tpu.memory_space<vmem>>, vector<32x192xbf16>
    %c208 = arith.constant 208 : index
    %c0_52 = arith.constant 0 : index
    %142 = vector.load %arg1[%c208, %c0_52] : memref<704x128xbf16, #tpu.memory_space<vmem>>, vector<192x64xbf16>
    %cst_53 = arith.constant dense<0.000000e+00> : vector<32x64xf32>
    %143 = tpu.matmul %141, %142, %cst_53 {dimension_numbers = #tpu.dot_dimension_numbers<[1], [0], [0], [1], [0, 0, 1, 1], [], []>} : vector<32x192xbf16>, vector<192x64xbf16>, vector<32x64xf32> -> vector<32x64xf32>
    %144 = vector.extract_strided_slice %0 {offsets = [6, 0], sizes = [1, 64], strides = [1, 1]} : vector<16x128xf32> to vector<1x64xf32>
    %145 = vector.broadcast %144 : vector<1x64xf32> to vector<32x64xf32>
    %146 = arith.addf %143, %145 : vector<32x64xf32>
    %cst_54 = arith.constant dense<0.000000e+00> : vector<64xf32>
    %147 = vector.multi_reduction <add>, %146, %cst_54 [0] : vector<32x64xf32> to vector<64xf32>
    %148 = vector.shape_cast %147 : vector<64xf32> to vector<1x64xf32>
    %cst_55 = arith.constant 3.200000e+01 : f32
    %149 = vector.broadcast %cst_55 : f32 to vector<1x64xf32>
    %150 = arith.divf %148, %149 : vector<1x64xf32>
    %151 = arith.mulf %146, %146 : vector<32x64xf32>
    %cst_56 = arith.constant dense<0.000000e+00> : vector<64xf32>
    %152 = vector.multi_reduction <add>, %151, %cst_56 [0] : vector<32x64xf32> to vector<64xf32>
    %153 = vector.shape_cast %152 : vector<64xf32> to vector<1x64xf32>
    %cst_57 = arith.constant 3.200000e+01 : f32
    %154 = vector.broadcast %cst_57 : f32 to vector<1x64xf32>
    %155 = arith.divf %153, %154 : vector<1x64xf32>
    %156 = arith.mulf %150, %150 : vector<1x64xf32>
    %157 = arith.subf %155, %156 : vector<1x64xf32>
    %cst_58 = arith.constant 0.000000e+00 : f32
    %158 = vector.broadcast %cst_58 : f32 to vector<1x64xf32>
    %159 = arith.maximumf %157, %158 : vector<1x64xf32>
    %cst_59 = arith.constant 9.99999974E-6 : f32
    %160 = vector.broadcast %cst_59 : f32 to vector<1x64xf32>
    %161 = arith.addf %159, %160 : vector<1x64xf32>
    %162 = math.rsqrt %161 : vector<1x64xf32>
    %163 = vector.extract_strided_slice %0 {offsets = [7, 0], sizes = [1, 64], strides = [1, 1]} : vector<16x128xf32> to vector<1x64xf32>
    %164 = arith.mulf %162, %163 : vector<1x64xf32>
    %165 = vector.extract_strided_slice %0 {offsets = [8, 0], sizes = [1, 64], strides = [1, 1]} : vector<16x128xf32> to vector<1x64xf32>
    %166 = arith.mulf %150, %164 : vector<1x64xf32>
    %167 = arith.subf %165, %166 : vector<1x64xf32>
    %168 = vector.broadcast %164 : vector<1x64xf32> to vector<32x64xf32>
    %169 = arith.mulf %146, %168 : vector<32x64xf32>
    %170 = vector.broadcast %167 : vector<1x64xf32> to vector<32x64xf32>
    %171 = arith.addf %169, %170 : vector<32x64xf32>
    %cst_60 = arith.constant 0.000000e+00 : f32
    %172 = vector.broadcast %cst_60 : f32 to vector<32x64xf32>
    %173 = arith.maximumf %171, %172 : vector<32x64xf32>
    %c0_61 = arith.constant 0 : index
    %c0_62 = arith.constant 0 : index
    %174 = vector.load %arg5[%c0_61, %c0_62] : memref<32x64xf32, #tpu.memory_space<vmem>>, vector<32x64xf32>
    tpu.vector_store %arg5[%c0_61, %c0_62], %173 {strides = array<i32>} : memref<32x64xf32, #tpu.memory_space<vmem>>, vector<32x64xf32>,
    %c0_63 = arith.constant 0 : index
    %c0_64 = arith.constant 0 : index
    %175 = tpu.strided_load %arg5[%c0_63, %c0_64] {strides = array<i32: 2, 1>} : memref<32x64xf32, #tpu.memory_space<vmem>>, vector<16x64xf32>
    %c1 = arith.constant 1 : index
    %c0_65 = arith.constant 0 : index
    %176 = tpu.strided_load %arg5[%c1, %c0_65] {strides = array<i32: 2, 1>} : memref<32x64xf32, #tpu.memory_space<vmem>>, vector<16x64xf32>
    %c1_i32_66 = arith.constant 1 : i32
    %177 = tpu.dynamic_rotate %176 by %c1_i32_66 dim 0 : vector<16x64xf32>, i32 -> vector<16x64xf32>
    %cst_67 = arith.constant 0.000000e+00 : f32
    %178 = vector.shape_cast %40 : vector<16x1xi1> to vector<16x1xi1>
    %179 = vector.broadcast %178 : vector<16x1xi1> to vector<16x64xi1>
    %180 = vector.broadcast %cst_67 : f32 to vector<16x64xf32>
    %181 = arith.select %179, %177, %180 : vector<16x64xi1>, vector<16x64xf32>
    %182 = arith.truncf %181 : vector<16x64xf32> to vector<16x64xbf16>
    %c0_68 = arith.constant 0 : index
    %c0_69 = arith.constant 0 : index
    %183 = vector.load %arg4[%c0_68, %c0_69] : memref<32x192xbf16, #tpu.memory_space<vmem>>, vector<16x64xbf16>
    tpu.vector_store %arg4[%c0_68, %c0_69], %182 {strides = array<i32>} : memref<32x192xbf16, #tpu.memory_space<vmem>>, vector<16x64xbf16>,
    %184 = arith.truncf %175 : vector<16x64xf32> to vector<16x64xbf16>
    %c0_70 = arith.constant 0 : index
    %c64_71 = arith.constant 64 : index
    %185 = vector.load %arg4[%c0_70, %c64_71] : memref<32x192xbf16, #tpu.memory_space<vmem>>, vector<16x64xbf16>
    tpu.vector_store %arg4[%c0_70, %c64_71], %184 {strides = array<i32>} : memref<32x192xbf16, #tpu.memory_space<vmem>>, vector<16x64xbf16>,
    %186 = arith.truncf %176 : vector<16x64xf32> to vector<16x64xbf16>
    %c0_72 = arith.constant 0 : index
    %c128_73 = arith.constant 128 : index
    %187 = vector.load %arg4[%c0_72, %c128_73] : memref<32x192xbf16, #tpu.memory_space<vmem>>, vector<16x64xbf16>
    tpu.vector_store %arg4[%c0_72, %c128_73], %186 {strides = array<i32>} : memref<32x192xbf16, #tpu.memory_space<vmem>>, vector<16x64xbf16>,
    %c0_74 = arith.constant 0 : index
    %c0_75 = arith.constant 0 : index
    %188 = vector.load %arg4[%c0_74, %c0_75] : memref<32x192xbf16, #tpu.memory_space<vmem>>, vector<16x192xbf16>
    %c400 = arith.constant 400 : index
    %c0_76 = arith.constant 0 : index
    %189 = vector.load %arg1[%c400, %c0_76] : memref<704x128xbf16, #tpu.memory_space<vmem>>, vector<192x64xbf16>
    %cst_77 = arith.constant dense<0.000000e+00> : vector<16x64xf32>
    %190 = tpu.matmul %188, %189, %cst_77 {dimension_numbers = #tpu.dot_dimension_numbers<[1], [0], [0], [1], [0, 0, 1, 1], [], []>} : vector<16x192xbf16>, vector<192x64xbf16>, vector<16x64xf32> -> vector<16x64xf32>
    %191 = vector.extract_strided_slice %0 {offsets = [9, 0], sizes = [1, 64], strides = [1, 1]} : vector<16x128xf32> to vector<1x64xf32>
    %192 = vector.broadcast %191 : vector<1x64xf32> to vector<16x64xf32>
    %193 = arith.addf %190, %192 : vector<16x64xf32>
    %cst_78 = arith.constant dense<0.000000e+00> : vector<64xf32>
    %194 = vector.multi_reduction <add>, %193, %cst_78 [0] : vector<16x64xf32> to vector<64xf32>
    %195 = vector.shape_cast %194 : vector<64xf32> to vector<1x64xf32>
    %cst_79 = arith.constant 1.600000e+01 : f32
    %196 = vector.broadcast %cst_79 : f32 to vector<1x64xf32>
    %197 = arith.divf %195, %196 : vector<1x64xf32>
    %198 = arith.mulf %193, %193 : vector<16x64xf32>
    %cst_80 = arith.constant dense<0.000000e+00> : vector<64xf32>
    %199 = vector.multi_reduction <add>, %198, %cst_80 [0] : vector<16x64xf32> to vector<64xf32>
    %200 = vector.shape_cast %199 : vector<64xf32> to vector<1x64xf32>
    %cst_81 = arith.constant 1.600000e+01 : f32
    %201 = vector.broadcast %cst_81 : f32 to vector<1x64xf32>
    %202 = arith.divf %200, %201 : vector<1x64xf32>
    %203 = arith.mulf %197, %197 : vector<1x64xf32>
    %204 = arith.subf %202, %203 : vector<1x64xf32>
    %cst_82 = arith.constant 0.000000e+00 : f32
    %205 = vector.broadcast %cst_82 : f32 to vector<1x64xf32>
    %206 = arith.maximumf %204, %205 : vector<1x64xf32>
    %cst_83 = arith.constant 9.99999974E-6 : f32
    %207 = vector.broadcast %cst_83 : f32 to vector<1x64xf32>
    %208 = arith.addf %206, %207 : vector<1x64xf32>
    %209 = math.rsqrt %208 : vector<1x64xf32>
    %210 = vector.extract_strided_slice %0 {offsets = [10, 0], sizes = [1, 64], strides = [1, 1]} : vector<16x128xf32> to vector<1x64xf32>
    %211 = arith.mulf %209, %210 : vector<1x64xf32>
    %212 = vector.extract_strided_slice %0 {offsets = [11, 0], sizes = [1, 64], strides = [1, 1]} : vector<16x128xf32> to vector<1x64xf32>
    %213 = arith.mulf %197, %211 : vector<1x64xf32>
    %214 = arith.subf %212, %213 : vector<1x64xf32>
    %215 = vector.broadcast %211 : vector<1x64xf32> to vector<16x64xf32>
    %216 = arith.mulf %193, %215 : vector<16x64xf32>
    %217 = vector.broadcast %214 : vector<1x64xf32> to vector<16x64xf32>
    %218 = arith.addf %216, %217 : vector<16x64xf32>
    %cst_84 = arith.constant 0.000000e+00 : f32
    %219 = vector.broadcast %cst_84 : f32 to vector<16x64xf32>
    %220 = arith.maximumf %218, %219 : vector<16x64xf32>
    %c592 = arith.constant 592 : index
    %c0_85 = arith.constant 0 : index
    %221 = vector.load %arg1[%c592, %c0_85] : memref<704x128xbf16, #tpu.memory_space<vmem>>, vector<64x128xbf16>
    %222 = arith.truncf %220 : vector<16x64xf32> to vector<16x64xbf16>
    %cst_86 = arith.constant dense<0.000000e+00> : vector<16x128xf32>
    %223 = tpu.matmul %222, %221, %cst_86 {dimension_numbers = #tpu.dot_dimension_numbers<[1], [0], [0], [1], [0, 0, 1, 1], [], []>} : vector<16x64xbf16>, vector<64x128xbf16>, vector<16x128xf32> -> vector<16x128xf32>
    %224 = vector.extract_strided_slice %0 {offsets = [12, 0], sizes = [1, 128], strides = [1, 1]} : vector<16x128xf32> to vector<1x128xf32>
    %225 = vector.broadcast %224 : vector<1x128xf32> to vector<16x128xf32>
    %226 = arith.addf %223, %225 : vector<16x128xf32>
    %c0_87 = arith.constant 0 : index
    %c0_88 = arith.constant 0 : index
    %227 = tpu.strided_load %arg0[%c0_87, %c0_88] {strides = array<i32: 2, 1>} : memref<32x128xf32, #tpu.memory_space<vmem>>, vector<16x128xf32>
    %228 = vector.extract_strided_slice %227 {offsets = [0, 0], sizes = [16, 16], strides = [1, 1]} : vector<16x128xf32> to vector<16x16xf32>
    %c1_89 = arith.constant 1 : index
    %c0_90 = arith.constant 0 : index
    %229 = tpu.strided_load %arg0[%c1_89, %c0_90] {strides = array<i32: 2, 1>} : memref<32x128xf32, #tpu.memory_space<vmem>>, vector<16x128xf32>
    %230 = vector.extract_strided_slice %229 {offsets = [0, 0], sizes = [16, 16], strides = [1, 1]} : vector<16x128xf32> to vector<16x16xf32>
    %c1_i32_91 = arith.constant 1 : i32
    %231 = tpu.dynamic_rotate %230 by %c1_i32_91 dim 0 : vector<16x16xf32>, i32 -> vector<16x16xf32>
    %cst_92 = arith.constant 0.000000e+00 : f32
    %232 = vector.shape_cast %40 : vector<16x1xi1> to vector<16x1xi1>
    %233 = vector.broadcast %232 : vector<16x1xi1> to vector<16x16xi1>
    %234 = vector.broadcast %cst_92 : f32 to vector<16x16xf32>
    %235 = arith.select %233, %231, %234 : vector<16x16xi1>, vector<16x16xf32>
    %236 = arith.truncf %235 : vector<16x16xf32> to vector<16x16xbf16>
    %c0_93 = arith.constant 0 : index
    %c0_94 = arith.constant 0 : index
    %237 = vector.load %arg4[%c0_93, %c0_94] : memref<32x192xbf16, #tpu.memory_space<vmem>>, vector<16x16xbf16>
    tpu.vector_store %arg4[%c0_93, %c0_94], %236 {strides = array<i32>} : memref<32x192xbf16, #tpu.memory_space<vmem>>, vector<16x16xbf16>,
    %238 = arith.truncf %228 : vector<16x16xf32> to vector<16x16xbf16>
    %c0_95 = arith.constant 0 : index
    %c16_96 = arith.constant 16 : index
    %239 = vector.load %arg4[%c0_95, %c16_96] : memref<32x192xbf16, #tpu.memory_space<vmem>>, vector<16x16xbf16>
    tpu.vector_store %arg4[%c0_95, %c16_96], %238 {strides = array<i32>} : memref<32x192xbf16, #tpu.memory_space<vmem>>, vector<16x16xbf16>,
    %240 = arith.truncf %230 : vector<16x16xf32> to vector<16x16xbf16>
    %c0_97 = arith.constant 0 : index
    %c32 = arith.constant 32 : index
    %241 = vector.load %arg4[%c0_97, %c32] : memref<32x192xbf16, #tpu.memory_space<vmem>>, vector<16x16xbf16>
    tpu.vector_store %arg4[%c0_97, %c32], %240 {strides = array<i32>} : memref<32x192xbf16, #tpu.memory_space<vmem>>, vector<16x16xbf16>,
    %c0_98 = arith.constant 0 : index
    %c0_99 = arith.constant 0 : index
    %242 = vector.load %arg4[%c0_98, %c0_99] : memref<32x192xbf16, #tpu.memory_space<vmem>>, vector<16x48xbf16>
    %c656 = arith.constant 656 : index
    %c0_100 = arith.constant 0 : index
    %243 = vector.load %arg1[%c656, %c0_100] : memref<704x128xbf16, #tpu.memory_space<vmem>>, vector<48x128xbf16>
    %cst_101 = arith.constant dense<0.000000e+00> : vector<16x128xf32>
    %244 = tpu.matmul %242, %243, %cst_101 {dimension_numbers = #tpu.dot_dimension_numbers<[1], [0], [0], [1], [0, 0, 1, 1], [], []>} : vector<16x48xbf16>, vector<48x128xbf16>, vector<16x128xf32> -> vector<16x128xf32>
    %245 = vector.extract_strided_slice %0 {offsets = [13, 0], sizes = [1, 128], strides = [1, 1]} : vector<16x128xf32> to vector<1x128xf32>
    %246 = vector.broadcast %245 : vector<1x128xf32> to vector<16x128xf32>
    %247 = arith.addf %244, %246 : vector<16x128xf32>
    %248 = arith.addf %226, %247 : vector<16x128xf32>
    %cst_102 = arith.constant dense<0.000000e+00> : vector<128xf32>
    %249 = vector.multi_reduction <add>, %248, %cst_102 [0] : vector<16x128xf32> to vector<128xf32>
    %250 = vector.shape_cast %249 : vector<128xf32> to vector<1x128xf32>
    %cst_103 = arith.constant 1.600000e+01 : f32
    %251 = vector.broadcast %cst_103 : f32 to vector<1x128xf32>
    %252 = arith.divf %250, %251 : vector<1x128xf32>
    %253 = arith.mulf %248, %248 : vector<16x128xf32>
    %cst_104 = arith.constant dense<0.000000e+00> : vector<128xf32>
    %254 = vector.multi_reduction <add>, %253, %cst_104 [0] : vector<16x128xf32> to vector<128xf32>
    %255 = vector.shape_cast %254 : vector<128xf32> to vector<1x128xf32>
    %cst_105 = arith.constant 1.600000e+01 : f32
    %256 = vector.broadcast %cst_105 : f32 to vector<1x128xf32>
    %257 = arith.divf %255, %256 : vector<1x128xf32>
    %258 = arith.mulf %252, %252 : vector<1x128xf32>
    %259 = arith.subf %257, %258 : vector<1x128xf32>
    %cst_106 = arith.constant 0.000000e+00 : f32
    %260 = vector.broadcast %cst_106 : f32 to vector<1x128xf32>
    %261 = arith.maximumf %259, %260 : vector<1x128xf32>
    %cst_107 = arith.constant 9.99999974E-6 : f32
    %262 = vector.broadcast %cst_107 : f32 to vector<1x128xf32>
    %263 = arith.addf %261, %262 : vector<1x128xf32>
    %264 = math.rsqrt %263 : vector<1x128xf32>
    %265 = vector.extract_strided_slice %0 {offsets = [14, 0], sizes = [1, 128], strides = [1, 1]} : vector<16x128xf32> to vector<1x128xf32>
    %266 = arith.mulf %264, %265 : vector<1x128xf32>
    %267 = vector.extract_strided_slice %0 {offsets = [15, 0], sizes = [1, 128], strides = [1, 1]} : vector<16x128xf32> to vector<1x128xf32>
    %268 = arith.mulf %252, %266 : vector<1x128xf32>
    %269 = arith.subf %267, %268 : vector<1x128xf32>
    %270 = vector.broadcast %266 : vector<1x128xf32> to vector<16x128xf32>
    %271 = arith.mulf %248, %270 : vector<16x128xf32>
    %272 = vector.broadcast %269 : vector<1x128xf32> to vector<16x128xf32>
    %273 = arith.addf %271, %272 : vector<16x128xf32>
    %cst_108 = arith.constant 0.000000e+00 : f32
    %274 = vector.broadcast %cst_108 : f32 to vector<16x128xf32>
    %275 = arith.maximumf %273, %274 : vector<16x128xf32>
    %c0_109 = arith.constant 0 : index
    %c0_110 = arith.constant 0 : index
    %276 = vector.load %arg3[%c0_109, %c0_110] : memref<16x128xf32, #tpu.memory_space<vmem>>, vector<16x128xf32>
    tpu.vector_store %arg3[%c0_109, %c0_110], %275 {strides = array<i32>} : memref<16x128xf32, #tpu.memory_space<vmem>>, vector<16x128xf32>,
    return
  }
}

</mosaic_0001>

<bundles_post_ra>
// kernel: forward.1
= control target key start
LH: loop header
LB: loop body
LE: loop exit
PB: predicated region body
PF: predicated region fallthrough
CT: control target
= control target key end

     0   :  { %8 = vsyncpa [#allocation5], 0  ;;  %s1459_s12 = smov [#allocation4]   ;;  %s1806_s0 = inlined_call_operand.vmem [shape: f32[32,128], index: 0, kind: input, shape index: {}]   ;;  %s1807_s1 = inlined_call_operand.hbm [shape: bf16[704,128], index: 1, kind: input, shape index: {}]   ;;  %s1808_s2 = inlined_call_operand.vmem [shape: f32[16,128], index: 2, kind: input, shape index: {}]   ;;  %s1809_s3 = inlined_call_operand.vmem [shape: f32[16,128], index: 3, kind: output, shape index: {}]  }
   0x1   :  { %s16_s13 = sshll.u32 %s1459_s12, 4  ;;  %s1435_s16 = scalar_lea.hbm %s1807_s1, 5632  ;;  %s17_s13 = int_to_ptr.vmem [resolvable:$true] %s16_s13 }
   0x2   :  { %p1436_p0 = scmp.ne.s32.totalorder %s1807_s1, %s1435_s16  ;;  %p1439_p1 = scmp.lt.u32.totalorder %s1435_s16, %s1807_s1 }
   0x4   :  { %p1441_p2 = pnand %p1439_p1, %p1436_p0 }
   0x6   :  { %1444 = shalt.err (!%p1441_p2)
}
   0x7   :  { %s1445_s21 = scalar_lea.vmem %s17_s13, 5632  ;;  %p1450_p4 = scmp.lt.s32.totalorder %s17_s13, %s17_s13 }
   0x8   :  { %p1446_p3 = scmp.ne.s32.totalorder %s17_s13, %s1445_s21  ;;  %p1451_p5 = scmp.lt.s32.totalorder %s1445_s21, %s1445_s21 }
   0xa   :  { %p1452_p6 = por %p1451_p5, %p1450_p4 }
   0xc   :  { %p1453_p7 = pnand %p1452_p6, %p1446_p3 }
   0xe   :  { %1456 = shalt.err (!%p1453_p7)
}
   0xf   :  { %s1460_s22 = smov 64   ;;  %s1461_s23 = smov 4  }
  0x10   :  { %22 = dma.hbm_to_vmem [thread:$0]  %s1807_s1, 5632, %s17_s13, [#allocation5], %s1460_s22, %s1460_s22, %s1461_s23  }
  0x11   :  { %1457 = dma.done.wait [#allocation5], 5632  }
  0x12   :  { %1458 = vsyncadd [#allocation5], 4294961664  ;;  %v1381_v0 = vld [vmem:[#allocation4] sm:$0xff]   ;;  %v119_v2 = vld [vmem:[%s1806_s0 + $0x8] sm:$0xff]  ;;  %vm136_vm0 = vcmask 130048   ;;  %v1462_v8 = vmov 0   ;;  %v31_v18 = vlaneseq }
  0x13   :  { %v118_v1 = vld [vmem:[%s1806_s0] sm:$0xff]  ;;  %v120_v3 = vld [vmem:[%s1806_s0 + $0x10] sm:$0xff]  ;;  %1337 = vmatprep.subr.bf16.mxu0 %v1381_v0  ;;  %v121_v5 = vld [vmem:[%s1806_s0 + $0x18] sm:$0xff]  ;;  %430 = vmatprep.subr.bf16.mxu1 %v1462_v8  ;;  %vm192_vm1 = vcmask 523264   ;;  %vm313_vm8 = vcmask 1048064   ;;  %s1463_s15 = smov 16  }
  0x14   :  { %v124_v4 = vpack.c.bf16 %v119_v2, %v118_v1  ;;  %1338 = vmatpush3.bf16.msra.mxu0 %v1381_v0  ;;  %v125_v6 = vpack.c.bf16 %v121_v5, %v120_v3  ;;  %v1382_v7 = vld [vmem:[#allocation4 + $0x8] sm:$0xff]   ;;  %v1383_v9 = vld [vmem:[#allocation4 + $0x10] sm:$0xff]   ;;  %v1384_v10 = vld [vmem:[#allocation4 + $0x18] sm:$0xff]   ;;  %v1527_v19 = vshrl.u32 %v31_v18, 7  ;;  %vm1466_vm11 = vmmov 0  }
  0x15   :  { %696 = vmatprep.subr.bf16.mxu0 %v1462_v8  ;;  %431 = vmatpush1.bf16.msra.mxu1 %v1382_v7  ;;  %v1385_v11 = vld [vmem:[#allocation4 + $0x20] sm:$0xff]   ;;  %v1386_v12 = vld [vmem:[#allocation4 + $0x28] sm:$0xff]   ;;  %v1387_v13 = vld [vmem:[#allocation4 + $0x30] sm:$0xff]   ;;  %vm1134_vm12 = vcmask 261248   ;;  %vm1141_vm13 = vcmask 392448   ;;  %vm1172_vm14 = vcmask 392192  }
  0x16   :  { %1339 = vmatprep.mubr.msk.bf16.mxu0 %vm136_vm0, %v124_v4  ;;  %432 = vmatprep.subr.bf16.mxu1 %v1462_v8  ;;  %v1388_v14 = vld [vmem:[#allocation4 + $0x38] sm:$0xff]   ;;  %v1389_v15 = vld [vmem:[#allocation4 + $0x40] sm:$0xff]   ;;  %v1390_v16 = vld [vmem:[#allocation4 + $0x48] sm:$0xff]   ;;  %v128_v20 = vsub.s32 0, %v1527_v19  ;;  %v239_v3 = vsub.s32 1, %v1527_v19  ;;  %vm282_vm2 = vcmp.lt.s32.totalorder %v1527_v19, 7 }
  0x17   :  { %1340 = vmatmul.mubr.msk.bf16.vlgmr.msra.gmra.mrb[0].mxu0 %vm136_vm0, %v125_v6  ;;  %v1391_v17 = vld [vmem:[#allocation4 + $0x50] sm:$0xff]   ;;  %v1533_v21 = vld [vmem:[%s1808_s2] sm:$0xff]  ;;  %vm261_vm6 = vcmp.lt.s32.totalorder %v1527_v19, 1 }
  0x18   :  { %v129_v22 = vrot.slane %v1533_v21, %v128_v20 }
  0x19   :  { %433 = vmatpush1.bf16.msra.mxu1 %v1383_v9  ;;  %v247_v9 = vsub.s32 2, %v1527_v19 }
  0x1a   :  { %434 = vmatprep.subr.bf16.mxu1 %v1462_v8 }
  0x1d   :  { %435 = vmatpush1.bf16.msra.mxu1 %v1384_v10  ;;  %v1392_v10 = vld [vmem:[#allocation4 + $0x58] sm:$0xff]  }
  0x1e   :  { %436 = vmatprep.subr.bf16.mxu1 %v1462_v8 }
  0x21   :  { %437 = vmatpush1.bf16.msra.mxu1 %v1385_v11 }
  0x22   :  { %438 = vmatprep.subr.bf16.mxu1 %v1462_v8 }
  0x25   :  { %439 = vmatpush1.bf16.msra.mxu1 %v1386_v12 }
  0x26   :  { %440 = vmatprep.subr.bf16.mxu1 %v1462_v8 }
  0x29   :  { %441 = vmatpush1.bf16.msra.mxu1 %v1387_v13 }
  0x2a   :  { %442 = vmatprep.subr.bf16.mxu1 %v1462_v8 }
  0x2d   :  { %443 = vmatpush1.bf16.msra.mxu1 %v1388_v14 }
  0x2e   :  { %444 = vmatprep.subr.bf16.mxu1 %v1462_v8 }
  0x31   :  { %445 = vmatpush1.bf16.msra.mxu1 %v1389_v15  ;;  %v1552_v15 = vadd.s32 8, %v1527_v19 }
  0x32   :  { %446 = vmatprep.subr.bf16.mxu1 %v1462_v8 }
  0x35   :  { %447 = vmatpush1.bf16.msra.mxu1 %v1390_v16  ;;  %v35_v16 = vadd.s32 24, %v1527_v19 }
  0x36   :  { %448 = vmatprep.subr.bf16.mxu1 %v1462_v8 }
  0x39   :  { %449 = vmatpush1.bf16.msra.mxu1 %v1391_v17 }
  0x3a   :  { %450 = vmatprep.subr.bf16.mxu1 %v1462_v8 }
  0x3d   :  { %451 = vmatpush1.bf16.msra.mxu1 %v1392_v10 }
  0x3e   :  { %452 = vmatprep.subr.bf16.mxu1 %v1462_v8 }
  0xea   :  { %v1341_v23 = vpop.f32.mrb[0].mxu0 }
  0xeb   :  { %v177_v24 = vpop.f32.mrb[1].mxu0  ;;  %v186_v25 = vadd.f32 %v1341_v23, %v129_v22  ;;  %v1393_v23 = vld [vmem:[#allocation4 + $0x60] sm:$0xff]  }
  0xec   :  { %v178_v26 = vadd.f32 %v177_v24, %v129_v22  ;;  %v1342_v27 = vpop.f32.mrb[2].mxu0  ;;  %453 = vmatpush1.bf16.msra.mxu1 %v1393_v23  ;;  %v1401_v23 = vld [vmem:[#allocation4 + $0xa0] sm:$0xff]  }
  0xed   :  { %v180_v28 = vpop.f32.mrb[3].mxu0  ;;  %v189_v30 = vadd.f32 %v1342_v27, %v129_v22  ;;  %v210_v32 = vmul.f32 %v186_v25, %v186_v25  ;;  %v196_v37 = vsel %vm192_vm1, %v186_v25, 0.0  ;;  %v40_v27 = vand.u32 15, %v1527_v19  ;;  %944 = vmatprep.subr.bf16.mxu1 %v1462_v8 }
  0xee   :  { %v208_v29 = vmul.f32 %v178_v26, %v178_v26  ;;  %v181_v31 = vadd.f32 %v180_v28, %v129_v22  ;;  %v193_v33 = vsel %vm192_vm1, %v178_v26, 0.0  ;;  %v34_v22 = vadd.s32 16, %v1527_v19 }
  0xef   :  { %v211_v39 = vmul.f32 %v189_v30, %v189_v30  ;;  %v215_v43 = vsel %vm192_vm1, %v210_v32, 0.0  ;;  %v198_v44 = vsel %vm192_vm1, %v189_v30, 0.0  ;;  %vm1572_vm5 = vcmp.ne.s32.totalorder %v40_v27, 0 }
  0xf0   :  { %v194_v34 = vsel %vm192_vm1, %v181_v31, 0.0  ;;  %v209_v35 = vmul.f32 %v181_v31, %v181_v31  ;;  %v212_v38 = vsel %vm192_vm1, %v208_v29, 0.0  ;;  %v54_v32 = vand.u32 15, %v34_v22  ;;  %v1400_v22 = vld [vmem:[#allocation4 + $0x98] sm:$0xff]  }
  0xf1   :  { %v195_v36 = vadd.f32 %v194_v34, %v193_v33  ;;  %v217_v47 = vsel %vm192_vm1, %v211_v39, 0.0 }
  0xf2   :  { %v213_v40 = vsel %vm192_vm1, %v209_v35, 0.0  ;;  %vm1580_vm7 = vcmp.ne.s32.totalorder %v54_v32, 0 }
  0xf3   :  { %v197_v41 = vadd.f32 %v196_v37, %v195_v36  ;;  %v214_v42 = vadd.f32 %v213_v40, %v212_v38 }
  0xf5   :  { %v199_v45 = vadd.f32 %v198_v44, %v197_v41  ;;  %v216_v46 = vadd.f32 %v215_v43, %v214_v42 }
  0xf7   :  { %v200_v48 = vrot.slane %v199_v45, 4  ;;  %v218_v49 = vadd.f32 %v217_v47, %v216_v46 }
  0xf9   :  { %v201_v50 = vadd.f32 %v200_v48, %v199_v45  ;;  %v219_v51 = vrot.slane %v218_v49, 4 }
  0xfb   :  { %v202_v52 = vrot.slane %v201_v50, 2  ;;  %v220_v53 = vadd.f32 %v219_v51, %v218_v49 }
  0xfd   :  { %v203_v54 = vadd.f32 %v202_v52, %v201_v50  ;;  %v221_v55 = vrot.slane %v220_v53, 2 }
  0xff   :  { %v204_v56 = vrot.slane %v203_v54, 1  ;;  %v222_v57 = vadd.f32 %v221_v55, %v220_v53 }
 0x101   :  { %v205_v58 = vadd.f32 %v204_v56, %v203_v54  ;;  %v223_v59 = vrot.slane %v222_v57, 1 }
 0x103   :  { %v207_v60 = vmul.f32 0.03125, %v205_v58  ;;  %v224_v61 = vadd.f32 %v223_v59, %v222_v57 }
 0x105   :  { %v225_v62 = vmul.f32 0.03125, %v224_v61  ;;  %v226_v63 = vmul.f32 %v207_v60, %v207_v60 }
 0x107   :  { %v227_v0 = vsub.f32 %v225_v62, %v226_v63 }
 0x109   :  { %v228_v1 = vmax.f32 %v227_v0, 0.0 }
 0x10b   :  { %v229_v2 = vadd.f32 1e-05, %v228_v1 }
 0x10d   :  { %1425 = vrsqrt.f32 %v229_v2 }
 0x117   :  { %v1426_v4 = vpop.eup %1425 }
 0x118   :  { %v231_v5 = vmul.f32 %v1426_v4, %v1533_v21 }
 0x11a   :  { %v232_v6 = vmul.f32 %v231_v5, %v207_v60  ;;  %v240_v7 = vrot.slane %v231_v5, %v239_v3 }
 0x11c   :  { %v242_v11 = vmul.f32 %v240_v7, %v181_v31  ;;  %v234_v12 = vrot.slane %v232_v6, 7  ;;  %v241_v13 = vmul.f32 %v240_v7, %v178_v26  ;;  %v243_v14 = vmul.f32 %v240_v7, %v186_v25 }
 0x11d   :  { %v244_v17 = vmul.f32 %v240_v7, %v189_v30  ;;  %v47_v26 = vand.u32 15, %v1552_v15  ;;  %v61_v25 = vand.u32 15, %v35_v16  ;;  %v1397_v16 = vld [vmem:[#allocation4 + $0x80] sm:$0xff]  }
 0x11e   :  { %v236_v18 = vsub.f32 %v1533_v21, %v234_v12  ;;  %v1394_v12 = vld [vmem:[#allocation4 + $0x68] sm:$0xff]  }
 0x11f   :  { %vm1564_vm3 = vcmp.ne.s32.totalorder %v47_v26, 15  ;;  %vm1568_vm4 = vcmp.ne.s32.totalorder %v61_v25, 15  ;;  %697 = vmatpush1.bf16.msra.mxu0 %v1394_v12  ;;  %v1403_v26 = vld [vmem:[#allocation4 + $0xb0] sm:$0xff]   ;;  %v350_v25 = vsub.s32 3, %v1527_v19 }
 0x120   :  { %v248_v24 = vrot.slane %v236_v18, %v247_v9  ;;  %698 = vmatprep.subr.bf16.mxu0 %v1462_v8  ;;  %v1399_v18 = vld [vmem:[#allocation4 + $0x90] sm:$0xff]  }
 0x121   :  { %v351_v27 = vrot.slane %v1533_v21, %v350_v25 }
 0x122   :  { %v249_v28 = vadd.f32 %v248_v24, %v241_v13  ;;  %v250_v29 = vadd.f32 %v248_v24, %v242_v11  ;;  %v251_v30 = vadd.f32 %v248_v24, %v243_v14  ;;  %v252_v31 = vadd.f32 %v248_v24, %v244_v17  ;;  %v1395_v13 = vld [vmem:[#allocation4 + $0x70] sm:$0xff]   ;;  %v1396_v14 = vld [vmem:[#allocation4 + $0x78] sm:$0xff]   ;;  %v1398_v17 = vld [vmem:[#allocation4 + $0x88] sm:$0xff]  }
 0x123   :  { %699 = vmatpush1.bf16.msra.mxu0 %v1395_v13  ;;  %v1402_v24 = vld [vmem:[#allocation4 + $0xa8] sm:$0xff]  }
 0x124   :  { %v253_v33 = vmax.f32 %v249_v28, 0.0  ;;  %v254_v34 = vmax.f32 %v250_v29, 0.0  ;;  %v255_v35 = vmax.f32 %v251_v30, 0.0  ;;  %v256_v36 = vmax.f32 %v252_v31, 0.0  ;;  %700 = vmatprep.subr.bf16.mxu0 %v1462_v8 }
 0x126   :  { %v258_v40 = vrot.slane %v254_v34, 7  ;;  %v279_v41 = vrot.slane %v254_v34, 1  ;;  %v303_v42 = vpack.c.bf16 %v254_v34, %v253_v33  ;;  %v257_v43 = vrot.slane %v253_v33, 7 }
 0x127   :  { %v278_v44 = vrot.slane %v253_v33, 1  ;;  %v259_v45 = vrot.slane %v255_v35, 7  ;;  %v260_v46 = vrot.slane %v256_v36, 7  ;;  %v280_v47 = vrot.slane %v255_v35, 1  ;;  %701 = vmatpush1.bf16.msra.mxu0 %v1396_v14 }
 0x128   :  { %307 = vrot.lane.b32.xlu0 %v303_v42, %s1460_s22  ;;  %v281_v48 = vrot.slane %v256_v36, 1  ;;  %v304_v49 = vpack.c.bf16 %v256_v36, %v255_v35  ;;  %v264_v50 = vsel %vm261_vm6, %v257_v43, %v258_v40  ;;  %702 = vmatprep.subr.bf16.mxu0 %v1462_v8 }
 0x129   :  { %v285_v52 = vsel %vm282_vm2, %v278_v44, %v279_v41  ;;  %v284_v53 = vsel %vm282_vm2, %v279_v41, %v280_v47  ;;  %v265_v54 = vsel %vm261_vm6, %v260_v46, %v257_v43  ;;  %v262_v55 = vsel %vm261_vm6, %v259_v45, %v260_v46 }
 0x12a   :  { %v283_v56 = vsel %vm282_vm2, %v280_v47, %v281_v48  ;;  %v296_v57 = vsel %vm1564_vm3, %v284_v53, 0.0  ;;  %v286_v58 = vsel %vm282_vm2, %v281_v48, %v278_v44  ;;  %v274_v59 = vsel %vm1572_vm5, %v265_v54, 0.0 }
 0x12b   :  { %v298_v60 = vsel %vm1568_vm4, %v286_v58, 0.0  ;;  %v316_v61 = vpack.c.bf16 %v296_v57, %v285_v52  ;;  %v299_v62 = vpack.c.bf16 %v264_v50, %v274_v59  ;;  %v263_v63 = vsel %vm261_vm6, %v258_v40, %v259_v45  ;;  %703 = vmatpush1.bf16.msra.mxu0 %v1397_v16 }
 0x12c   :  { %309 = vrot.lane.b32.xlu0 %v304_v49, %s1460_s22  ;;  %v317_v0 = vpack.c.bf16 %v298_v60, %v283_v56  ;;  %v276_v1 = vsel %vm1580_vm7, %v263_v63, 0.0  ;;  %704 = vmatprep.subr.bf16.mxu0 %v1462_v8 }
 0x12d   :  { %318 = vst.msk [vmem:[#allocation2 + $0x8] sm:$0xff] %vm192_vm1, %v316_v61  ;;  %301 = vst.msk [vmem:[#allocation2] sm:$0xff] %vm192_vm1, %v299_v62  ;;  %v300_v2 = vpack.c.bf16 %v262_v55, %v276_v1 }
 0x12e   :  { %319 = vst.msk [vmem:[#allocation2 + $0x18] sm:$0xff] %vm192_vm1, %v317_v0 }
 0x12f   :  { %302 = vst.msk [vmem:[#allocation2 + $0x10] sm:$0xff] %vm192_vm1, %v300_v2  ;;  %705 = vmatpush1.bf16.msra.mxu0 %v1398_v17 }
 0x130   :  { %706 = vmatprep.subr.bf16.mxu0 %v1462_v8 }
 0x133   :  { %707 = vmatpush1.bf16.msra.mxu0 %v1399_v18 }
 0x134   :  { %v321_v4 = vld [vmem:[#allocation2 + $0x8] sm:$0xff]  ;;  %708 = vmatprep.subr.bf16.mxu0 %v1462_v8 }
 0x135   :  { %1284 = vmatprep.mubr.msk.bf16.mxu1 %vm192_vm1, %v321_v4  ;;  %v323_v10 = vld [vmem:[#allocation2 + $0x18] sm:$0xff] }
 0x137   :  { %709 = vmatpush1.bf16.msra.mxu0 %v1400_v22 }
 0x138   :  { %710 = vmatprep.subr.bf16.mxu0 %v1462_v8 }
 0x13b   :  { %711 = vmatpush1.bf16.msra.mxu0 %v1401_v23  ;;  %v524_v23 = vsub.s32 4, %v1527_v19 }
 0x13c   :  { %712 = vmatprep.subr.bf16.mxu0 %v1462_v8 }
 0x13f   :  { %713 = vmatpush1.bf16.msra.mxu0 %v1402_v24 }
 0x140   :  { %714 = vmatprep.subr.bf16.mxu0 %v1462_v8 }
 0x143   :  { %715 = vmatpush1.bf16.msra.mxu0 %v1403_v26 }
 0x144   :  { %716 = vmatprep.subr.bf16.mxu0 %v1462_v8 }
 0x19a   :  { %v308_v5 = vpop.permute.xlu0 %307 }
 0x19b   :  { %314 = vst.msk [vmem:[#allocation2] sm:$0xff] %vm313_vm8, %v308_v5 }
 0x19e   :  { %v310_v6 = vpop.permute.xlu0 %309 }
 0x19f   :  { %315 = vst.msk [vmem:[#allocation2 + $0x10] sm:$0xff] %vm313_vm8, %v310_v6 }
 0x1a2   :  { %v320_v7 = vld [vmem:[#allocation2] sm:$0xff] }
 0x1a3   :  { %463 = vmatmul.mubr.bf16.vlgmr.msra.gmra.mrb[0].mxu1 %v320_v7 }
 0x1a4   :  { %1285 = vmatprep.mubr.msk.bf16.mxu1 %vm192_vm1, %v323_v10 }
 0x1a6   :  { %v322_v11 = vld [vmem:[#allocation2 + $0x10] sm:$0xff] }
 0x1ab   :  { %471 = vmatmul.mubr.bf16.gmra.mrb[4].mxu1 %v322_v11 }
 0x276   :  { %v464_v28 = vpop.f32.mrb[0].mxu1 }
 0x277   :  { %v465_v29 = vadd.f32 %v464_v28, %v351_v27  ;;  %v466_v30 = vpop.f32.mrb[1].mxu1 }
 0x278   :  { %v467_v31 = vpop.f32.mrb[2].mxu1  ;;  %v532_v30 = vsub.s32 5, %v1527_v19 }
 0x279   :  { %v493_v32 = vmul.f32 %v465_v29, %v465_v29  ;;  %v468_v33 = vadd.f32 %v467_v31, %v351_v27  ;;  %v469_v34 = vpop.f32.mrb[3].mxu1  ;;  %v479_v35 = vsel %vm192_vm1, %v465_v29, 0.0  ;;  %v1404_v31 = vld [vmem:[#allocation4 + $0xb8] sm:$0xff]  }
 0x27a   :  { %717 = vmatpush1.bf16.msra.mxu0 %v1404_v31  ;;  %v1411_v31 = vld [vmem:[#allocation4 + $0xf0] sm:$0xff]  }
 0x27b   :  { %v480_v36 = vsel %vm192_vm1, %v468_v33, 0.0  ;;  %v494_v40 = vmul.f32 %v468_v33, %v468_v33  ;;  %v497_v42 = vsel %vm192_vm1, %v493_v32, 0.0  ;;  %718 = vmatprep.subr.bf16.mxu0 %v1462_v8 }
 0x27c   :  { %v481_v41 = vadd.f32 %v480_v36, %v479_v35 }
 0x27d   :  { %v498_v43 = vsel %vm192_vm1, %v494_v40, 0.0 }
 0x27e   :  { %v499_v44 = vadd.f32 %v498_v43, %v497_v42  ;;  %v472_v45 = vpop.f32.mrb[4].mxu1  ;;  %v1405_v42 = vld [vmem:[#allocation4 + $0xc0] sm:$0xff]  }
 0x27f   :  { %v473_v46 = vadd.f32 %v472_v45, %v351_v27  ;;  %v474_v47 = vpop.f32.mrb[5].mxu1  ;;  %719 = vmatpush1.bf16.msra.mxu0 %v1405_v42 }
 0x280   :  { %v475_v48 = vpop.f32.mrb[6].mxu1 }
 0x281   :  { %v482_v49 = vsel %vm192_vm1, %v473_v46, 0.0  ;;  %v495_v50 = vmul.f32 %v473_v46, %v473_v46  ;;  %v476_v52 = vadd.f32 %v475_v48, %v351_v27  ;;  %v477_v53 = vpop.f32.mrb[7].mxu1 }
 0x282   :  { %v483_v54 = vadd.f32 %v482_v49, %v481_v41 }
 0x283   :  { %v500_v55 = vsel %vm192_vm1, %v495_v50, 0.0  ;;  %v484_v56 = vsel %vm192_vm1, %v476_v52, 0.0  ;;  %v496_v57 = vmul.f32 %v476_v52, %v476_v52 }
 0x284   :  { %v501_v58 = vadd.f32 %v500_v55, %v499_v44  ;;  %v485_v59 = vadd.f32 %v484_v56, %v483_v54 }
 0x285   :  { %v502_v60 = vsel %vm192_vm1, %v496_v57, 0.0 }
 0x286   :  { %v486_v61 = vrot.slane %v485_v59, 4  ;;  %v503_v62 = vadd.f32 %v502_v60, %v501_v58 }
 0x288   :  { %v487_v63 = vadd.f32 %v486_v61, %v485_v59  ;;  %v504_v0 = vrot.slane %v503_v62, 4 }
 0x28a   :  { %v488_v1 = vrot.slane %v487_v63, 2  ;;  %v505_v2 = vadd.f32 %v504_v0, %v503_v62 }
 0x28c   :  { %v489_v4 = vadd.f32 %v488_v1, %v487_v63  ;;  %v506_v5 = vrot.slane %v505_v2, 2 }
 0x28e   :  { %v490_v6 = vrot.slane %v489_v4, 1  ;;  %v507_v7 = vadd.f32 %v506_v5, %v505_v2 }
 0x290   :  { %v491_v10 = vadd.f32 %v490_v6, %v489_v4  ;;  %v508_v11 = vrot.slane %v507_v7, 1 }
 0x292   :  { %v492_v12 = vmul.f32 0.03125, %v491_v10  ;;  %v509_v13 = vadd.f32 %v508_v11, %v507_v7 }
 0x294   :  { %v510_v14 = vmul.f32 0.03125, %v509_v13  ;;  %v511_v16 = vmul.f32 %v492_v12, %v492_v12 }
 0x296   :  { %v512_v17 = vsub.f32 %v510_v14, %v511_v16 }
 0x298   :  { %v513_v18 = vmax.f32 %v512_v17, 0.0 }
 0x29a   :  { %v514_v22 = vadd.f32 1e-05, %v513_v18 }
 0x29c   :  { %1427 = vrsqrt.f32 %v514_v22  ;;  %v1406_v22 = vld [vmem:[#allocation4 + $0xc8] sm:$0xff]  }
 0x29d   :  { %945 = vmatpush1.bf16.msra.mxu1 %v1406_v22 }
 0x29e   :  { %946 = vmatprep.subr.bf16.mxu1 %v1462_v8 }
 0x2a6   :  { %v1428_v24 = vpop.eup %1427 }
 0x2a7   :  { %v516_v26 = vmul.f32 %v1428_v24, %v1533_v21  ;;  %v1407_v24 = vld [vmem:[#allocation4 + $0xd0] sm:$0xff]  }
 0x2a8   :  { %947 = vmatpush1.bf16.msra.mxu1 %v1407_v24 }
 0x2a9   :  { %v517_v27 = vmul.f32 %v516_v26, %v492_v12  ;;  %v525_v28 = vrot.slane %v516_v26, %v524_v23  ;;  %v1408_v26 = vld [vmem:[#allocation4 + $0xd8] sm:$0xff]   ;;  %948 = vmatprep.subr.bf16.mxu1 %v1462_v8 }
 0x2ab   :  { %v519_v32 = vrot.slane %v517_v27, 7  ;;  %v529_v34 = vmul.f32 %v525_v28, %v476_v52  ;;  %v526_v35 = vmul.f32 %v525_v28, %v465_v29  ;;  %v527_v36 = vmul.f32 %v525_v28, %v468_v33  ;;  %v1409_v27 = vld [vmem:[#allocation4 + $0xe0] sm:$0xff]  }
 0x2ac   :  { %v528_v40 = vmul.f32 %v525_v28, %v473_v46  ;;  %949 = vmatpush1.bf16.msra.mxu1 %v1408_v26  ;;  %v1410_v28 = vld [vmem:[#allocation4 + $0xe8] sm:$0xff]  }
 0x2ad   :  { %v521_v41 = vsub.f32 %v1533_v21, %v519_v32  ;;  %950 = vmatprep.subr.bf16.mxu1 %v1462_v8  ;;  %v1412_v32 = vld [vmem:[#allocation4 + $0xf8] sm:$0xff]  }
 0x2af   :  { %v533_v43 = vrot.slane %v521_v41, %v532_v30 }
 0x2b0   :  { %951 = vmatpush1.bf16.msra.mxu1 %v1409_v27 }
 0x2b1   :  { %v534_v44 = vadd.f32 %v533_v43, %v526_v35  ;;  %v535_v45 = vadd.f32 %v533_v43, %v527_v36  ;;  %v536_v47 = vadd.f32 %v533_v43, %v528_v40  ;;  %v537_v48 = vadd.f32 %v533_v43, %v529_v34  ;;  %952 = vmatprep.subr.bf16.mxu1 %v1462_v8  ;;  %v1413_v34 = vld [vmem:[#allocation4 + $0x100] sm:$0xff]   ;;  %v1414_v35 = vld [vmem:[#allocation4 + $0x108] sm:$0xff]   ;;  %v1415_v36 = vld [vmem:[#allocation4 + $0x110] sm:$0xff]  }
 0x2b2   :  { %v616_v40 = vsub.s32 6, %v1527_v19 }
 0x2b3   :  { %v538_v49 = vmax.f32 %v534_v44, 0.0  ;;  %v539_v50 = vmax.f32 %v535_v45, 0.0  ;;  %v540_v52 = vmax.f32 %v536_v47, 0.0  ;;  %v541_v29 = vmax.f32 %v537_v48, 0.0 }
 0x2b4   :  { %953 = vmatpush1.bf16.msra.mxu1 %v1410_v28  ;;  %v617_v41 = vrot.slane %v1533_v21, %v616_v40 }
 0x2b5   :  { %v543_v33 = vrot.slane %v539_v50, 7  ;;  %v555_v46 = vrot.slane %v539_v50, 1  ;;  %v570_v53 = vpack.c.bf16 %v539_v50, %v538_v49  ;;  %v542_v54 = vrot.slane %v538_v49, 7  ;;  %954 = vmatprep.subr.bf16.mxu1 %v1462_v8 }
 0x2b6   :  { %v554_v55 = vrot.slane %v538_v49, 1  ;;  %v544_v56 = vrot.slane %v540_v52, 7  ;;  %v545_v57 = vrot.slane %v541_v29, 7  ;;  %v556_v58 = vrot.slane %v540_v52, 1 }
 0x2b7   :  { %574 = vrot.lane.b32.xlu1 %v570_v53, %s1460_s22  ;;  %v548_v59 = vsel %vm261_vm6, %v542_v54, %v543_v33  ;;  %v557_v60 = vrot.slane %v541_v29, 1  ;;  %v571_v61 = vpack.c.bf16 %v541_v29, %v540_v52 }
 0x2b8   :  { %v560_v62 = vsel %vm282_vm2, %v554_v55, %v555_v46  ;;  %v546_v63 = vsel %vm261_vm6, %v544_v56, %v545_v57  ;;  %v547_v0 = vsel %vm261_vm6, %v543_v33, %v544_v56  ;;  %v559_v1 = vsel %vm282_vm2, %v555_v46, %v556_v58  ;;  %955 = vmatpush1.bf16.msra.mxu1 %v1411_v31 }
 0x2b9   :  { %v552_v2 = vsel %vm1580_vm7, %v547_v0, 0.0  ;;  %v558_v4 = vsel %vm282_vm2, %v556_v58, %v557_v60  ;;  %v563_v5 = vsel %vm1564_vm3, %v559_v1, 0.0  ;;  %v549_v6 = vsel %vm261_vm6, %v545_v57, %v542_v54  ;;  %956 = vmatprep.subr.bf16.mxu1 %v1462_v8 }
 0x2ba   :  { %v567_v7 = vpack.c.bf16 %v546_v63, %v552_v2  ;;  %v550_v10 = vsel %vm1572_vm5, %v549_v6, 0.0  ;;  %v561_v11 = vsel %vm282_vm2, %v557_v60, %v554_v55  ;;  %v582_v12 = vpack.c.bf16 %v563_v5, %v560_v62 }
 0x2bb   :  { %576 = vrot.lane.b32.xlu1 %v571_v61, %s1460_s22  ;;  %v565_v51 = vsel %vm1568_vm4, %v561_v11, 0.0  ;;  %v566_v13 = vpack.c.bf16 %v548_v59, %v550_v10 }
 0x2bc   :  { %v583_v14 = vpack.c.bf16 %v565_v51, %v558_v4  ;;  %584 = vst.msk [vmem:[#allocation2 + $0x8] sm:$0xff] %vm192_vm1, %v582_v12  ;;  %569 = vst.msk [vmem:[#allocation2 + $0x10] sm:$0xff] %vm192_vm1, %v567_v7  ;;  %957 = vmatpush1.bf16.msra.mxu1 %v1412_v32  ;;  %v790_v32 = vsub.s32 7, %v1527_v19 }
 0x2bd   :  { %568 = vst.msk [vmem:[#allocation2] sm:$0xff] %vm192_vm1, %v566_v13  ;;  %958 = vmatprep.subr.bf16.mxu1 %v1462_v8 }
 0x2be   :  { %585 = vst.msk [vmem:[#allocation2 + $0x18] sm:$0xff] %vm192_vm1, %v583_v14 }
 0x2c0   :  { %959 = vmatpush1.bf16.msra.mxu1 %v1413_v34 }
 0x2c1   :  { %960 = vmatprep.subr.bf16.mxu1 %v1462_v8 }
 0x2c3   :  { %v587_v37 = vld [vmem:[#allocation2 + $0x8] sm:$0xff] }
 0x2c4   :  { %1298 = vmatprep.mubr.msk.bf16.mxu0 %vm192_vm1, %v587_v37  ;;  %961 = vmatpush1.bf16.msra.mxu1 %v1414_v35 }
 0x2c5   :  { %v589_v17 = vld [vmem:[#allocation2 + $0x18] sm:$0xff]  ;;  %962 = vmatprep.subr.bf16.mxu1 %v1462_v8 }
 0x2c8   :  { %963 = vmatpush1.bf16.msra.mxu1 %v1415_v36 }
 0x2c9   :  { %964 = vmatprep.subr.bf16.mxu1 %v1462_v8 }
 0x329   :  { %v575_v39 = vpop.permute.xlu1 %574 }
 0x32a   :  { %580 = vst.msk [vmem:[#allocation2] sm:$0xff] %vm313_vm8, %v575_v39 }
 0x32d   :  { %v577_v16 = vpop.permute.xlu1 %576 }
 0x32e   :  { %581 = vst.msk [vmem:[#allocation2 + $0x10] sm:$0xff] %vm313_vm8, %v577_v16 }
 0x331   :  { %v586_v38 = vld [vmem:[#allocation2] sm:$0xff] }
 0x332   :  { %729 = vmatmul.mubr.bf16.vlgmr.msra.gmra.mrb[4].mxu0 %v586_v38 }
 0x333   :  { %1299 = vmatprep.mubr.msk.bf16.mxu0 %vm192_vm1, %v589_v17 }
 0x335   :  { %v588_v18 = vld [vmem:[#allocation2 + $0x10] sm:$0xff] }
 0x33a   :  { %737 = vmatmul.mubr.bf16.gmra.mrb[8].mxu0 %v588_v18 }
 0x405   :  { %v730_v42 = vpop.f32.mrb[4].mxu0 }
 0x406   :  { %v731_v43 = vadd.f32 %v730_v42, %v617_v41  ;;  %v732_v44 = vpop.f32.mrb[5].mxu0  ;;  %v1709_v42 = vld [vmem:[%s1808_s2 + $0x8] sm:$0xff] }
 0x407   :  { %v733_v45 = vpop.f32.mrb[6].mxu0 }
 0x408   :  { %v759_v47 = vmul.f32 %v731_v43, %v731_v43  ;;  %v734_v48 = vadd.f32 %v733_v45, %v617_v41  ;;  %v735_v49 = vpop.f32.mrb[7].mxu0  ;;  %v745_v50 = vsel %vm192_vm1, %v731_v43, 0.0 }
 0x40a   :  { %v746_v52 = vsel %vm192_vm1, %v734_v48, 0.0  ;;  %v760_v29 = vmul.f32 %v734_v48, %v734_v48  ;;  %v763_v46 = vsel %vm192_vm1, %v759_v47, 0.0 }
 0x40b   :  { %v747_v33 = vadd.f32 %v746_v52, %v745_v50 }
 0x40c   :  { %v764_v53 = vsel %vm192_vm1, %v760_v29, 0.0 }
 0x40d   :  { %v765_v54 = vadd.f32 %v764_v53, %v763_v46  ;;  %v738_v55 = vpop.f32.mrb[8].mxu0 }
 0x40e   :  { %v739_v56 = vadd.f32 %v738_v55, %v617_v41  ;;  %v740_v57 = vpop.f32.mrb[9].mxu0 }
 0x40f   :  { %v741_v58 = vpop.f32.mrb[10].mxu0 }
 0x410   :  { %v748_v59 = vsel %vm192_vm1, %v739_v56, 0.0  ;;  %v761_v60 = vmul.f32 %v739_v56, %v739_v56  ;;  %v742_v61 = vadd.f32 %v741_v58, %v617_v41  ;;  %v743_v62 = vpop.f32.mrb[11].mxu0 }
 0x411   :  { %v749_v63 = vadd.f32 %v748_v59, %v747_v33  ;;  %v1416_v59 = vld [vmem:[#allocation4 + $0x118] sm:$0xff]  }
 0x412   :  { %v766_v0 = vsel %vm192_vm1, %v761_v60, 0.0  ;;  %v750_v1 = vsel %vm192_vm1, %v742_v61, 0.0  ;;  %v762_v2 = vmul.f32 %v742_v61, %v742_v61  ;;  %965 = vmatpush1.bf16.msra.mxu1 %v1416_v59  ;;  %v1318_v62 = vld [vmem:[%s1806_s0 + $0x10] ss:$2 sm:$0xff] }
 0x413   :  { %v767_v4 = vadd.f32 %v766_v0, %v765_v54  ;;  %v751_v5 = vadd.f32 %v750_v1, %v749_v63  ;;  %966 = vmatprep.subr.bf16.mxu1 %v1462_v8 }
 0x414   :  { %v768_v6 = vsel %vm192_vm1, %v762_v2, 0.0 }
 0x415   :  { %v752_v7 = vrot.slane %v751_v5, 4  ;;  %v769_v10 = vadd.f32 %v768_v6, %v767_v4  ;;  %v1319_v6 = vld [vmem:[%s1806_s0 + $0x1] ss:$2 sm:$0xff] }
 0x417   :  { %v753_v11 = vadd.f32 %v752_v7, %v751_v5  ;;  %v770_v12 = vrot.slane %v769_v10, 4 }
 0x419   :  { %v754_v51 = vrot.slane %v753_v11, 2  ;;  %v771_v13 = vadd.f32 %v770_v12, %v769_v10  ;;  %v1320_v10 = vld [vmem:[%s1806_s0 + $0x11] ss:$2 sm:$0xff] }
 0x41b   :  { %v755_v14 = vadd.f32 %v754_v51, %v753_v11  ;;  %v772_v37 = vrot.slane %v771_v13, 2  ;;  %v1121_v11 = vrot.slane %v1319_v6, 7 }
 0x41d   :  { %v756_v39 = vrot.slane %v755_v14, 1  ;;  %v773_v16 = vadd.f32 %v772_v37, %v771_v13  ;;  %v1122_v13 = vrot.slane %v1320_v10, 7 }
 0x41f   :  { %v757_v38 = vadd.f32 %v756_v39, %v755_v14  ;;  %v774_v17 = vrot.slane %v773_v16, 1  ;;  %v1136_v39 = vpack.c.bf16 %v1320_v10, %v1319_v6 }
 0x421   :  { %v758_v18 = vmul.f32 0.03125, %v757_v38  ;;  %v775_v22 = vadd.f32 %v774_v17, %v773_v16  ;;  %v1123_v38 = vsel %vm261_vm6, %v1121_v11, %v1122_v13  ;;  %v1124_v17 = vsel %vm261_vm6, %v1122_v13, %v1121_v11 }
 0x423   :  { %v776_v24 = vmul.f32 0.03125, %v775_v22  ;;  %v777_v26 = vmul.f32 %v758_v18, %v758_v18 }
 0x425   :  { %v778_v27 = vsub.f32 %v776_v24, %v777_v26 }
 0x427   :  { %v779_v28 = vmax.f32 %v778_v27, 0.0 }
 0x429   :  { %v780_v31 = vadd.f32 1e-05, %v779_v28 }
 0x42b   :  { %1429 = vrsqrt.f32 %v780_v31  ;;  %v1418_v31 = vld [vmem:[#allocation4 + $0x128] sm:$0xff]  }
 0x435   :  { %v1430_v34 = vpop.eup %1429 }
 0x436   :  { %v782_v35 = vmul.f32 %v1430_v34, %v1533_v21  ;;  %v1465_v34 = vmov 0.0  }
 0x437   :  { %1343 = vmatprep.subr.bf16.mxu0 %v1465_v34  ;;  %1351 = vmatprep.mubr.msk.bf16.mxu0 %vm1466_vm11, %v1465_v34 }
 0x438   :  { %v783_v36 = vmul.f32 %v782_v35, %v758_v18  ;;  %v791_v41 = vrot.slane %v782_v35, %v790_v32  ;;  %1344 = vmatpush3.bf16.msra.mxu0 %v1418_v31  ;;  %v1419_v35 = vld [vmem:[#allocation4 + $0x130] sm:$0xff]   ;;  %v1045_v31 = vrot.slane %v1709_v42, %v524_v23 }
 0x439   :  { %1345 = vmatprep.subr.bf16.mxu0 %v1465_v34 }
 0x43a   :  { %v785_v44 = vrot.slane %v783_v36, 7  ;;  %v792_v45 = vmul.f32 %v791_v41, %v731_v43  ;;  %v793_v47 = vmul.f32 %v791_v41, %v734_v48  ;;  %v794_v49 = vmul.f32 %v791_v41, %v739_v56  ;;  %v1417_v43 = vld [vmem:[#allocation4 + $0x120] sm:$0xff]   ;;  %v1420_v36 = vld [vmem:[#allocation4 + $0x138] sm:$0xff]  }
 0x43b   :  { %v795_v50 = vmul.f32 %v791_v41, %v742_v61  ;;  %v103_v48 = vand.u32 7, %v1552_v15  ;;  %967 = vmatpush1.bf16.msra.mxu1 %v1417_v43  ;;  %v1114_v61 = vld [vmem:[%s1806_s0] ss:$2 sm:$0xff]  ;;  %s1464_s0 = smov 32  }
 0x43c   :  { %v787_v52 = vsub.f32 %v1709_v42, %v785_v44  ;;  %v1129_v0 = vpack.c.bf16 %v1318_v62, %v1114_v61  ;;  %1346 = vmatpush3.bf16.msra.mxu0 %v1419_v35  ;;  %v1421_v41 = vld [vmem:[#allocation4 + $0x140] sm:$0xff]   ;;  %v1153_v35 = vrot.slane %v1709_v42, %v532_v30 }
 0x43d   :  { %vm1725_vm10 = vcmp.ne.s32.totalorder %v103_v48, 0  ;;  %1347 = vmatprep.subr.bf16.mxu0 %v1465_v34 }
 0x43e   :  { %v799_v29 = vrot.slane %v787_v52, %v128_v20  ;;  %v96_v20 = vand.u32 7, %v1527_v19  ;;  %1131 = vrot.lane.b32.xlu1 %v1129_v0, %s1463_s15  ;;  %v1126_v22 = vsel %vm1725_vm10, %v1123_v38, 0.0 }
 0x440   :  { %v800_v21 = vadd.f32 %v799_v29, %v792_v45  ;;  %v801_v33 = vadd.f32 %v799_v29, %v793_v47  ;;  %v802_v46 = vadd.f32 %v799_v29, %v794_v49  ;;  %v803_v53 = vadd.f32 %v799_v29, %v795_v50  ;;  %1348 = vmatpush3.bf16.msra.mxu0 %v1420_v36 }
 0x441   :  { %vm1721_vm9 = vcmp.ne.s32.totalorder %v96_v20, 0  ;;  %1349 = vmatprep.subr.bf16.mxu0 %v1465_v34  ;;  %v868_v47 = vrot.slane %v1709_v42, %v239_v3  ;;  %v1365_v36 = vadd.f32 %v1153_v35, %v1045_v31 }
 0x442   :  { %v804_v54 = vmax.f32 %v800_v21, 0.0  ;;  %v805_v55 = vmax.f32 %v801_v33, 0.0  ;;  %v806_v57 = vmax.f32 %v802_v46, 0.0  ;;  %v807_v58 = vmax.f32 %v803_v53, 0.0 }
 0x443   :  { %v1125_v18 = vsel %vm1721_vm9, %v1124_v17, 0.0 }
 0x444   :  { %808 = vst.msk [vmem:[#allocation3] sm:$0xff] %vm192_vm1, %v804_v54  ;;  %809 = vst.msk [vmem:[#allocation3 + $0x8] sm:$0xff] %vm192_vm1, %v805_v55  ;;  %v1127_v24 = vpack.c.bf16 %v1126_v22, %v1125_v18  ;;  %1350 = vmatpush3.bf16.msra.mxu0 %v1421_v41 }
 0x445   :  { %810 = vst.msk [vmem:[#allocation3 + $0x10] sm:$0xff] %vm192_vm1, %v806_v57  ;;  %811 = vst.msk [vmem:[#allocation3 + $0x18] sm:$0xff] %vm192_vm1, %v807_v58  ;;  %1355 = vmatprep.subr.bf16.mxu0 %v1465_v34 }
 0x44b   :  { %v816_v8 = vld [vmem:[#allocation3 + $0x1] ss:$2 sm:$0xff]  ;;  %v812_v15 = vld [vmem:[#allocation3] ss:$2 sm:$0xff] }
 0x44c   :  { %v818_v63 = vld [vmem:[#allocation3 + $0x11] ss:$2 sm:$0xff]  ;;  %v814_v2 = vld [vmem:[#allocation3 + $0x10] ss:$2 sm:$0xff]  ;;  %v819_v4 = vrot.slane %v816_v8, 7 }
 0x44d   :  { %v837_v1 = vpack.c.bf16 %v818_v63, %v816_v8  ;;  %v820_v5 = vrot.slane %v818_v63, 7  ;;  %v831_v7 = vpack.c.bf16 %v814_v2, %v812_v15 }
 0x44f   :  { %838 = vst.msk [vmem:[#allocation2 + $0x8] sm:$0xff] %vm192_vm1, %v837_v1  ;;  %v821_v12 = vsel %vm261_vm6, %v819_v4, %v820_v5  ;;  %v822_v51 = vsel %vm261_vm6, %v820_v5, %v819_v4  ;;  %833 = vrot.lane.b32.xlu0 %v831_v7, %s1460_s22 }
 0x450   :  { %v827_v14 = vsel %vm1721_vm9, %v822_v51, 0.0  ;;  %v828_v37 = vsel %vm1725_vm10, %v821_v12, 0.0 }
 0x451   :  { %v829_v16 = vpack.c.bf16 %v828_v37, %v827_v14 }
 0x453   :  { %830 = vst.msk [vmem:[#allocation2] sm:$0xff] %vm192_vm1, %v829_v16  ;;  %1138 = vrot.lane.b32.xlu0 %v1136_v39, %s1464_s0 }
 0x456   :  { %v840_v26 = vld [vmem:[#allocation2 + $0x8] sm:$0xff] }
 0x457   :  { %1312 = vmatprep.mubr.msk.bf16.mxu1 %vm192_vm1, %v840_v26  ;;  %v1422_v26 = vld [vmem:[#allocation4 + $0x148] sm:$0xff]  }
 0x4b0   :  { %v1132_v44 = vpop.permute.xlu1 %1131 }
 0x4c1   :  { %v834_v27 = vpop.permute.xlu0 %833 }
 0x4c2   :  { %836 = vst.msk [vmem:[#allocation2] sm:$0xff] %vm313_vm8, %v834_v27 }
 0x4c5   :  { %v1139_v45 = vpop.permute.xlu0 %1138 }
 0x4c9   :  { %v839_v28 = vld [vmem:[#allocation2] sm:$0xff] }
 0x4ca   :  { %977 = vmatmul.mubr.bf16.vlgmr.msra.gmra.mrb[8].mxu1 %v839_v28  ;;  %1128 = vst.msk [vmem:[#allocation2] sm:$0xff] %vm136_vm0, %v1127_v24  ;;  %v1423_v28 = vld [vmem:[#allocation4 + $0x150] sm:$0xff]  }
 0x4cb   :  { %1135 = vst.msk [vmem:[#allocation2] sm:$0xff] %vm1134_vm12, %v1132_v44 }
 0x4cc   :  { %1142 = vst.msk [vmem:[#allocation2] sm:$0xff] %vm1141_vm13, %v1139_v45 }
 0x59d   :  { %v978_v49 = vpop.f32.mrb[8].mxu1 }
 0x59e   :  { %v979_v50 = vadd.f32 %v978_v49, %v868_v47  ;;  %v980_v52 = vpop.f32.mrb[9].mxu1 }
 0x59f   :  { %v981_v29 = vpop.f32.mrb[10].mxu1 }
 0x5a0   :  { %v996_v21 = vmul.f32 %v979_v50, %v979_v50  ;;  %v982_v33 = vadd.f32 %v981_v29, %v868_v47  ;;  %v983_v46 = vpop.f32.mrb[11].mxu1  ;;  %v985_v53 = vsel %vm192_vm1, %v979_v50, 0.0 }
 0x5a2   :  { %v986_v54 = vsel %vm192_vm1, %v982_v33, 0.0  ;;  %v997_v55 = vmul.f32 %v982_v33, %v982_v33  ;;  %v998_v58 = vsel %vm192_vm1, %v996_v21, 0.0 }
 0x5a3   :  { %v987_v57 = vadd.f32 %v986_v54, %v985_v53 }
 0x5a4   :  { %v999_v59 = vsel %vm192_vm1, %v997_v55, 0.0 }
 0x5a5   :  { %v988_v43 = vrot.slane %v987_v57, 4  ;;  %v1000_v20 = vadd.f32 %v999_v59, %v998_v58 }
 0x5a7   :  { %v989_v3 = vadd.f32 %v988_v43, %v987_v57  ;;  %v1001_v48 = vrot.slane %v1000_v20, 4 }
 0x5a9   :  { %v990_v56 = vrot.slane %v989_v3, 2  ;;  %v1002_v60 = vadd.f32 %v1001_v48, %v1000_v20 }
 0x5ab   :  { %v991_v61 = vadd.f32 %v990_v56, %v989_v3  ;;  %v1003_v62 = vrot.slane %v1002_v60, 2 }
 0x5ad   :  { %v992_v8 = vrot.slane %v991_v61, 1  ;;  %v1004_v63 = vadd.f32 %v1003_v62, %v1002_v60 }
 0x5af   :  { %v993_v15 = vadd.f32 %v992_v8, %v991_v61  ;;  %v1005_v0 = vrot.slane %v1004_v63, 1 }
 0x5b1   :  { %v995_v1 = vmul.f32 0.0625, %v993_v15  ;;  %v1006_v2 = vadd.f32 %v1005_v0, %v1004_v63 }
 0x5b3   :  { %v1007_v4 = vmul.f32 0.0625, %v1006_v2  ;;  %v1008_v5 = vmul.f32 %v995_v1, %v995_v1 }
 0x5b5   :  { %v1009_v6 = vsub.f32 %v1007_v4, %v1008_v5 }
 0x5b7   :  { %v1010_v7 = vmax.f32 %v1009_v6, 0.0 }
 0x5b9   :  { %v1011_v10 = vadd.f32 1e-05, %v1010_v7 }
 0x5bb   :  { %1431 = vrsqrt.f32 %v1011_v10 }
 0x5c5   :  { %v1432_v11 = vpop.eup %1431 }
 0x5c6   :  { %v1013_v12 = vmul.f32 %v1432_v11, %v1709_v42 }
 0x5c8   :  { %v1014_v51 = vmul.f32 %v1013_v12, %v995_v1  ;;  %v1022_v13 = vrot.slane %v1013_v12, %v247_v9  ;;  %v1424_v9 = vld [vmem:[#allocation4 + $0x158] sm:$0xff]  }
 0x5ca   :  { %v1016_v14 = vrot.slane %v1014_v51, 7  ;;  %v1023_v37 = vmul.f32 %v1022_v13, %v979_v50  ;;  %v1024_v39 = vmul.f32 %v1022_v13, %v982_v33 }
 0x5cc   :  { %v1018_v16 = vsub.f32 %v1709_v42, %v1016_v14 }
 0x5ce   :  { %v1028_v38 = vrot.slane %v1018_v16, %v350_v25  ;;  %v1143_v25 = vld [vmem:[#allocation2] sm:$0xff] }
 0x5d0   :  { %v1029_v17 = vadd.f32 %v1028_v38, %v1023_v37  ;;  %v1030_v18 = vadd.f32 %v1028_v38, %v1024_v39 }
 0x5d2   :  { %v1031_v22 = vmax.f32 %v1029_v17, 0.0  ;;  %v1032_v24 = vmax.f32 %v1030_v18, 0.0 }
 0x5d4   :  { %v1041_v27 = vpack.c.bf16 %v1032_v24, %v1031_v22 }
 0x5d6   :  { %1352 = vmatmul.mubr.msk.bf16.vlgmr.msra.gmra.mrb[12].mxu0 %vm192_vm1, %v1041_v27 }
 0x5d7   :  { %1356 = vmatpush3.bf16.msra.mxu0 %v1422_v26  ;;  %1361 = vmatprep.mubr.msk.bf16.mxu0 %vm1466_vm11, %v1465_v34 }
 0x5d8   :  { %1357 = vmatprep.subr.bf16.mxu0 %v1465_v34 }
 0x5db   :  { %1358 = vmatpush3.bf16.msra.mxu0 %v1423_v28 }
 0x5dc   :  { %1359 = vmatprep.subr.bf16.mxu0 %v1465_v34 }
 0x5df   :  { %1360 = vmatpush3.bf16.msra.mxu0 %v1424_v9 }
 0x5e2   :  { %1362 = vmatmul.mubr.msk.bf16.vlgmr.msra.gmra.mrb[12].mxu0 %vm1172_vm14, %v1143_v25 }
 0x6b5   :  { %v1210_v41 = vpop.f32.mrb[12].mxu0 }
 0x6b6   :  { %v1366_v44 = vadd.f32 %v1365_v36, %v1210_v41  ;;  %v1363_v45 = vpop.f32.mrb[13].mxu0 }
 0x6b7   :  { %v1213_v47 = vpop.f32.mrb[14].mxu0 }
 0x6b8   :  { %v1368_v49 = vadd.f32 %v1365_v36, %v1213_v47  ;;  %v1364_v50 = vpop.f32.mrb[15].mxu0  ;;  %v1227_v34 = vmul.f32 %v1366_v44, %v1366_v44 }
 0x6ba   :  { %v1219_v52 = vadd.f32 %v1368_v49, %v1366_v44  ;;  %v1228_v29 = vmul.f32 %v1368_v49, %v1368_v49 }
 0x6bc   :  { %v1220_v21 = vrot.slane %v1219_v52, 4  ;;  %v1229_v33 = vadd.f32 %v1228_v29, %v1227_v34 }
 0x6be   :  { %v1221_v46 = vadd.f32 %v1220_v21, %v1219_v52  ;;  %v1230_v53 = vrot.slane %v1229_v33, 4 }
 0x6c0   :  { %v1222_v54 = vrot.slane %v1221_v46, 2  ;;  %v1231_v23 = vadd.f32 %v1230_v53, %v1229_v33 }
 0x6c2   :  { %v1223_v55 = vadd.f32 %v1222_v54, %v1221_v46  ;;  %v1232_v57 = vrot.slane %v1231_v23, 2 }
 0x6c4   :  { %v1224_v58 = vrot.slane %v1223_v55, 1  ;;  %v1233_v30 = vadd.f32 %v1232_v57, %v1231_v23 }
 0x6c6   :  { %v1225_v59 = vadd.f32 %v1224_v58, %v1223_v55  ;;  %v1234_v43 = vrot.slane %v1233_v30, 1 }
 0x6c8   :  { %v1226_v20 = vmul.f32 0.0625, %v1225_v59  ;;  %v1235_v3 = vadd.f32 %v1234_v43, %v1233_v30 }
 0x6ca   :  { %v1236_v48 = vmul.f32 0.0625, %v1235_v3  ;;  %v1237_v56 = vmul.f32 %v1226_v20, %v1226_v20 }
 0x6cc   :  { %v1238_v60 = vsub.f32 %v1236_v48, %v1237_v56 }
 0x6ce   :  { %v1239_v61 = vmax.f32 %v1238_v60, 0.0 }
 0x6d0   :  { %v1240_v62 = vadd.f32 1e-05, %v1239_v61 }
 0x6d2   :  { %1433 = vrsqrt.f32 %v1240_v62 }
 0x6dc   :  { %v1434_v8 = vpop.eup %1433 }
 0x6dd   :  { %v1242_v63 = vmul.f32 %v1434_v8, %v1709_v42 }
 0x6df   :  { %v1243_v15 = vmul.f32 %v1242_v63, %v1226_v20  ;;  %v1251_v0 = vrot.slane %v1242_v63, %v616_v40 }
 0x6e1   :  { %v1245_v1 = vrot.slane %v1243_v15, 7  ;;  %v1252_v2 = vmul.f32 %v1366_v44, %v1251_v0  ;;  %v1253_v4 = vmul.f32 %v1368_v49, %v1251_v0 }
 0x6e3   :  { %v1247_v5 = vsub.f32 %v1709_v42, %v1245_v1 }
 0x6e5   :  { %v1257_v6 = vrot.slane %v1247_v5, %v790_v32 }
 0x6e7   :  { %v1258_v7 = vadd.f32 %v1257_v6, %v1252_v2  ;;  %v1259_v10 = vadd.f32 %v1257_v6, %v1253_v4 }
 0x6e9   :  { %v1260_v11 = vmax.f32 %v1258_v7, 0.0  ;;  %v1261_v12 = vmax.f32 %v1259_v10, 0.0 }
 0x6eb   :  { %1262 = vst [vmem:[%s1809_s3] sm:$0xff] %v1260_v11  ;;  %1263 = vst [vmem:[%s1809_s3 + $0x8] sm:$0xff] %v1261_v12 }
 0x6ec   :  { %1268 = vsyncpa [#allocation5], 1 }

</bundles_post_ra>
